<compile_context>
chip_gen: v5e
topology: v5e:2x2
jax: 0.10.0
libtpu: 0.0.40
codegen_flags: <defaults>
</compile_context>

<pallas_src>
import functools

import jax
import jax.numpy as jnp
import numpy as np
from jax import lax
from jax.experimental import pallas as pl
from jax.experimental.pallas import tpu as pltpu


def _round_up(x, m):
    return (x + m - 1) // m * m


def _cdiv(a, b):
    return (a + b - 1) // b


# --------------------------------------------------------------------------
# kernel
# --------------------------------------------------------------------------


def _slstm_kernel(T, BB, Hp, TC, NC, compute_dtype,
                  x_ref, wih0_ref, wihr_ref, whh_ref, b_ref,
                  out_ref, hfin_ref, cfin_ref,
                  proj0_ref, proj1_ref):
    """One grid step = one (batch block, layer).

    x_ref    : (T*BB, I)     time-major layer-0 input slab (compute_dtype)
    wih0_ref : (I, 4*Hp)     layer-0 input weight (transposed, gate-padded)
    wihr_ref : (Hp, 4*Hp)    this layer's input weight (layers >= 1)
    whh_ref  : (Hp, 4*Hp)    this layer's recurrent weight
    b_ref    : (1, 4*Hp)     this layer's bias (f32)
    out_ref  : (T*BB, Hp)    this layer's h sequence (compute_dtype); doubles
                             as the next layer's input (block idx const in l)
    hfin_ref : (L, BB, Hp)   final hidden state per layer (f32)
    cfin_ref : (L, BB, Hp)   final cell state per layer (f32)
    proj0/1  : (TC*BB, 4*Hp) f32 ping-pong scratch: chunked input projection
    """
    layer = pl.program_id(1)
    f32 = jnp.float32
    trans_dtype = (jnp.bfloat16
                   if jnp.dtype(compute_dtype) == jnp.dtype(jnp.bfloat16)
                   else jnp.float32)

    w_hh = whh_ref[...]          # (Hp, 4*Hp) loaded once, reused every step
    bias = b_ref[...]            # (1, 4*Hp)  f32
    proj_bufs = (proj0_ref, proj1_ref)

    # ---- hoisted input projection for one time chunk (one big MXU matmul) --
    def project_chunk(c, pref):
        t0 = c * TC
        rows = min(TC, T - t0) * BB        # static, multiple of BB (>= 8)

        @pl.when(layer == 0)
        def _():
            xs = x_ref[pl.ds(t0 * BB, rows), :].astype(compute_dtype)
            pref[0:rows, :] = (
                jnp.dot(xs, wih0_ref[...], preferred_element_type=f32) + bias)

        @pl.when(layer > 0)
        def _():
            # previous layer's full h sequence is still resident in out_ref
            hs = out_ref[pl.ds(t0 * BB, rows), :].astype(compute_dtype)
            pref[0:rows, :] = (
                jnp.dot(hs, wihr_ref[...], preferred_element_type=f32) + bias)

    # ---- sequential sLSTM recurrence over one time chunk --------------------
    def run_chunk(c, pref, carry):
        t0 = c * TC
        tc_c = min(TC, T - t0)             # static chunk length

        def step(t, carry):
            h, cc = carry                                        # (BB, Hp) f32
            row = pl.multiple_of(t * BB, BB)
            gates = pref[pl.ds(row, BB), :] + jnp.dot(
                h.astype(compute_dtype), w_hh, preferred_element_type=f32)
            # exponential gating (matches the PyTorch reference: no m/n
            # stabilizer).  Gate slices are Hp-wide -> lane aligned.
            g = gates.astype(trans_dtype)
            i_g = jnp.exp(g[:, 0 * Hp:1 * Hp]).astype(f32)
            f_g = jnp.exp(g[:, 1 * Hp:2 * Hp]).astype(f32)
            g_g = jnp.tanh(g[:, 2 * Hp:3 * Hp]).astype(f32)
            o_g = jax.nn.sigmoid(g[:, 3 * Hp:4 * Hp]).astype(f32)
            c_new = f_g * cc + i_g * g_g
            h_new = o_g * jnp.tanh(c_new)
            orow = pl.multiple_of((t0 + t) * BB, BB)
            out_ref[pl.ds(orow, BB), :] = h_new.astype(out_ref.dtype)
            return h_new, c_new

        # short chunks: full unroll; long chunks: partial unroll for LLO
        # scheduler visibility across step boundaries.
        unroll = True if tc_c <= 16 else 8
        return lax.fori_loop(0, tc_c, step, carry, unroll=unroll)

    # ---- software-pipelined chunks: project chunk c+1 while recurring c -----
    project_chunk(0, proj_bufs[0])
    carry = (jnp.zeros((BB, Hp), f32), jnp.zeros((BB, Hp), f32))
    for c in range(NC):
        if c + 1 < NC:
            project_chunk(c + 1, proj_bufs[(c + 1) % 2])
        carry = run_chunk(c, proj_bufs[c % 2], carry)

    h_fin, c_fin = carry
    hfin_ref[layer] = h_fin
    cfin_ref[layer] = c_fin


# --------------------------------------------------------------------------
# wrapper
# --------------------------------------------------------------------------


def _pad_gates(w, H, Hp):
    """Pad the 4H gate axis (axis 0) so each gate i|f|g|o gets a lane-aligned
    Hp-wide slot (zeros in the padding)."""
    if Hp == H:
        return w
    lead = w.shape[1:]
    w4 = w.reshape((4, H) + lead)
    pad = [(0, 0), (0, Hp - H)] + [(0, 0)] * len(lead)
    return jnp.pad(w4, pad).reshape((4 * Hp,) + lead)


@functools.partial(jax.jit,
                   static_argnames=("hidden_size", "num_layers", "compute_dtype"))
def slstm_forward(input_seq, params, *, hidden_size, num_layers,
                  compute_dtype=jnp.bfloat16):
    """sLSTM forward.

    input_seq: (B, T, I) float32.
    params: list of (w_ih (4H,in), w_hh (4H,H), b (4H,)) per layer (PyTorch shapes).
    Returns (outputs (B, T, H) float32, [(h_l, c_l)] per layer).
    """
    B, T, I = input_seq.shape
    H = hidden_size
    L = num_layers
    Hp = _round_up(H, 128)           # lane-dense gate / output slots
    G = 4 * Hp
    cd = jnp.dtype(compute_dtype)
    cd_bytes = cd.itemsize

    # ---- per-generation hardware sizing ------------------------------------
    try:
        info = pltpu.get_tpu_info()
        vmem_cap = int(getattr(info, "vmem_capacity_bytes", 64 << 20))
    except Exception:
        vmem_cap = 64 << 20          # conservative (v7x has 64 MiB / core)
    try:
        kind = jax.devices()[0].device_kind.lower()
    except Exception:
        kind = ""
    two_cores = "v7" in kind         # v7x: 2 TensorCores share the grid

    # Batch block: as large as possible for MXU M-fill on single-TC chips;
    # ensure num_bb >= 2 on 2-TC chips so both cores get work.
    bb_max = 256 if ((not two_cores) and B >= 256 and vmem_cap >= (100 << 20)) else 128
    BB = min(_round_up(B, 8), bb_max)
    if two_cores and _round_up(B, 8) >= 16:
        BB = min(BB, _round_up(_cdiv(_round_up(B, 8), 2), 8))
    B_pad = _round_up(B, BB)
    num_bb = B_pad // BB
    TB = T * BB

    # ---- VMEM budget: fixed blocks + chunked projection scratch ------------
    I_lanes = _round_up(I, 128)
    fixed = (2 * TB * I_lanes * cd_bytes       # x block (double-buffered)
             + 2 * I_lanes * G * cd_bytes      # layer-0 input weight
             + 2 * 2 * Hp * G * cd_bytes       # deep input + recurrent weights
             + 2 * G * 4                       # bias
             + 2 * TB * Hp * cd_bytes          # h-sequence block
             + 2 * 2 * L * BB * Hp * 4)        # final h / c blocks
    vmem_budget = int(vmem_cap * 0.8)
    proj_budget = max(vmem_budget - fixed - (4 << 20), 2 * BB * G * 4)
    TC = max(1, min(T, proj_budget // (2 * BB * G * 4)))   # timesteps / chunk
    NC = _cdiv(T, TC)

    est_vmem = fixed + 2 * TC * BB * G * 4
    vmem_limit = int(min(max(est_vmem + (4 << 20), 32 << 20),
                         int(vmem_cap * 0.9)))

    # ---- layer-0 input: per-batch-block time-major 2-D slabs, compute dtype -
    x = jnp.transpose(input_seq, (1, 0, 2))                 # (T, B, I)
    x = jnp.pad(x, ((0, 0), (0, B_pad - B), (0, 0)))        # (T, B_pad, I)
    x = x.reshape(T, num_bb, BB, I)
    x = jnp.transpose(x, (1, 0, 2, 3)).reshape(num_bb, TB, I)
    x = x.astype(compute_dtype)

    # ---- weights: transpose to (in, 4Hp), pad gate slots, pad H, cast -------
    wih0 = None
    wihr_l, whh_l, bias_l = [], [], []
    for l, (w_ih, w_hh, b) in enumerate(params):
        w_ih_p = _pad_gates(w_ih, H, Hp)                     # (4Hp, in)
        w_hh_p = _pad_gates(w_hh, H, Hp)                     # (4Hp, H)
        w_hh_p = jnp.pad(w_hh_p, ((0, 0), (0, Hp - H)))      # (4Hp, Hp)
        b_p = _pad_gates(b, H, Hp).reshape(1, G)             # (1, 4Hp) f32
        if l == 0:
            wih0 = w_ih_p.T.astype(compute_dtype)            # (I, 4Hp)
        else:
            w_ih_p = jnp.pad(w_ih_p, ((0, 0), (0, Hp - H)))  # (4Hp, Hp)
            wihr_l.append(w_ih_p.T.astype(compute_dtype))    # (Hp, 4Hp)
        whh_l.append(w_hh_p.T.astype(compute_dtype))         # (Hp, 4Hp)
        bias_l.append(b_p)
    if wihr_l:
        wihr = jnp.stack(wihr_l)                             # (L-1, Hp, 4Hp)
    else:  # num_layers == 1: dummy (never read)
        wihr = jnp.zeros((1, Hp, G), compute_dtype)
    whh = jnp.stack(whh_l)                                   # (L, Hp, 4Hp)
    bias = jnp.stack(bias_l)                                 # (L, 1, 4Hp)

    kernel = functools.partial(_slstm_kernel, T, BB, Hp, TC, NC, compute_dtype)

    in_specs = [
        pl.BlockSpec((None, TB, I), lambda bb, l: (bb, 0, 0)),       # x
        pl.BlockSpec((I, G), lambda bb, l: (0, 0)),                  # W_ih layer 0
        pl.BlockSpec((None, Hp, G),
                     lambda bb, l: (jnp.maximum(l - 1, 0), 0, 0)),   # W_ih layers 1+
        pl.BlockSpec((None, Hp, G), lambda bb, l: (l, 0, 0)),        # W_hh
        pl.BlockSpec((None, 1, G), lambda bb, l: (l, 0, 0)),         # bias
    ]
    out_shape = (
        jax.ShapeDtypeStruct((num_bb, TB, Hp), compute_dtype),  # last-layer h seq
        jax.ShapeDtypeStruct((L, B_pad, Hp), jnp.float32),      # final h / layer
        jax.ShapeDtypeStruct((L, B_pad, Hp), jnp.float32),      # final c / layer
    )
    out_specs = (
        pl.BlockSpec((None, TB, Hp), lambda bb, l: (bb, 0, 0)),
        pl.BlockSpec((L, BB, Hp), lambda bb, l: (0, bb, 0)),
        pl.BlockSpec((L, BB, Hp), lambda bb, l: (0, bb, 0)),
    )

    out_seq, h_fin, c_fin = pl.pallas_call(
        kernel,
        out_shape=out_shape,
        grid_spec=pltpu.PrefetchScalarGridSpec(
            num_scalar_prefetch=0,
            grid=(num_bb, L),
            in_specs=in_specs,
            out_specs=out_specs,
            scratch_shapes=[pltpu.VMEM((TC * BB, G), jnp.float32),
                            pltpu.VMEM((TC * BB, G), jnp.float32)],
        ),
        compiler_params=pltpu.CompilerParams(
            dimension_semantics=("parallel", "arbitrary"),
            vmem_limit_bytes=vmem_limit,
        ),
    )(x, wih0, wihr, whh, bias)

    # Undo batch-block / time-major packing, drop lane/sublane padding.
    out_seq = out_seq.reshape(num_bb, T, BB, Hp)
    out_seq = jnp.transpose(out_seq, (1, 0, 2, 3)).reshape(T, B_pad, Hp)
    outputs = jnp.transpose(out_seq[:, :B, :H], (1, 0, 2)).astype(jnp.float32)
    hidden_state = [(h_fin[l, :B, :H], c_fin[l, :B, :H]) for l in range(L)]
    return outputs, hidden_state


# ---------------- parameter init (deterministic, matches nn.Module shapes) --


def xavier_uniform(key, shape):
    fan_out, fan_in = shape  # PyTorch convention for 2D weight (out, in)
    bound = float(np.sqrt(6.0 / (fan_in + fan_out)))
    return jax.random.uniform(key, shape, jnp.float32, -bound, bound)


def init_slstm_params(key, input_size, hidden_size, num_layers):
    params = []
    for l in range(num_layers):
        in_dim = input_size if l == 0 else hidden_size
        key, k1, k2 = jax.random.split(key, 3)
        w_ih = xavier_uniform(k1, (4 * hidden_size, in_dim))
        w_hh = xavier_uniform(k2, (4 * hidden_size, hidden_size))
        b = jnp.zeros((4 * hidden_size,), jnp.float32)
        params.append((w_ih, w_hh, b))
    return params


# ---------------- pure-JAX reference (mirrors the PyTorch forward) ----------


def slstm_reference(input_seq, params, hidden_size, num_layers):
    B, T, _ = input_seq.shape
    H = hidden_size
    hi = jax.lax.Precision.HIGHEST
    hs = [(jnp.zeros((B, H), jnp.float32), jnp.zeros((B, H), jnp.float32))
          for _ in range(num_layers)]
    outs = []
    for t in range(T):
        x = input_seq[:, t, :]
        for l, (w_ih, w_hh, b) in enumerate(params):
            h, c = hs[l]
            gates = (jnp.dot(x, w_ih.T, precision=hi) + b
                     + jnp.dot(h, w_hh.T, precision=hi))
            i_g = jnp.exp(gates[:, 0:H])
            f_g = jnp.exp(gates[:, H:2 * H])
            g_g = jnp.tanh(gates[:, 2 * H:3 * H])
            o_g = jax.nn.sigmoid(gates[:, 3 * H:4 * H])
            c = f_g * c + i_g * g_g
            h = o_g * jnp.tanh(c)
            hs[l] = (h, c)
            x = h  # dropout = 0.0
        outs.append(x)
    return jnp.stack(outs, axis=1), hs


if __name__ == "__main__":
    batch, seq_len = 2, 8
    input_size, hidden_size, num_layers = 16, 32, 2

    key = jax.random.PRNGKey(0)
    k_x, k_p = jax.random.split(key)
    x = jax.random.normal(k_x, (batch, seq_len, input_size), jnp.float32)
    params = init_slstm_params(k_p, input_size, hidden_size, num_layers)

    ref_out, ref_hs = slstm_reference(x, params, hidden_size, num_layers)

    # ---- f32 compute path: tight check against the f32 reference ----------
    out32, hs32 = slstm_forward(x, params, hidden_size=hidden_size,
                                num_layers=num_layers,
                                compute_dtype=jnp.float32)
    out32 = jax.block_until_ready(out32)
    np.testing.assert_allclose(np.asarray(out32), np.asarray(ref_out),
                               rtol=2e-3, atol=2e-3)
    for l in range(num_layers):
        np.testing.assert_allclose(np.asarray(hs32[l][0]),
                                   np.asarray(ref_hs[l][0]), rtol=2e-3, atol=2e-3)
        np.testing.assert_allclose(np.asarray(hs32[l][1]),
                                   np.asarray(ref_hs[l][1]), rtol=2e-3, atol=2e-3)

    # ---- bf16 compute path (default / MXU-native): loose check -------------
    outbf, hsbf = slstm_forward(x, params, hidden_size=hidden_size,
                                num_layers=num_layers,
                                compute_dtype=jnp.bfloat16)
    outbf = jax.block_until_ready(outbf)
    np.testing.assert_allclose(np.asarray(outbf), np.asarray(ref_out),
                               rtol=7.5e-2, atol=7.5e-2)
    for l in range(num_layers):
        np.testing.assert_allclose(np.asarray(hsbf[l][0]),
                                   np.asarray(ref_hs[l][0]), rtol=7.5e-2, atol=7.5e-2)
        np.testing.assert_allclose(np.asarray(hsbf[l][1]),
                                   np.asarray(ref_hs[l][1]), rtol=7.5e-2, atol=7.5e-2)

    print("KERNEL_OK")
</pallas_src>

<mosaic_0001>
module attributes {stable_mosaic.version = 11 : i64} {
  func.func @_slstm_kernel(%arg0: i32, %arg1: i32, %arg2: memref<1x64x16xf32, #tpu.memory_space<vmem>>, %arg3: memref<16x512xf32, #tpu.memory_space<vmem>>, %arg4: memref<1x128x512xf32, #tpu.memory_space<vmem>>, %arg5: memref<1x128x512xf32, #tpu.memory_space<vmem>>, %arg6: memref<1x1x512xf32, #tpu.memory_space<vmem>>, %arg7: memref<1x64x128xf32, #tpu.memory_space<vmem>>, %arg8: memref<2x8x128xf32, #tpu.memory_space<vmem>>, %arg9: memref<2x8x128xf32, #tpu.memory_space<vmem>>, %arg10: memref<64x512xf32, #tpu.memory_space<vmem>>, %arg11: memref<64x512xf32, #tpu.memory_space<vmem>>) attributes {dimension_semantics = [#tpu.dimension_semantics<parallel>, #tpu.dimension_semantics<arbitrary>], iteration_bounds = array<i64: 1, 2>, scalar_prefetch = 0 : i64, scratch_operands = 2 : i64, tpu.core_type = #tpu.core_type<tc>, window_params = [{transform_indices = @transform_0, window_bounds = array<i64: 1, 64, 16>}, {pipeline_mode = #tpu.pipeline_mode<synchronous>, transform_indices = @transform_1, window_bounds = array<i64: 16, 512>}, {transform_indices = @transform_2, window_bounds = array<i64: 1, 128, 512>}, {transform_indices = @transform_3, window_bounds = array<i64: 1, 128, 512>}, {transform_indices = @transform_4, window_bounds = array<i64: 1, 1, 512>}, {transform_indices = @transform_5, window_bounds = array<i64: 1, 64, 128>}, {transform_indices = @transform_6, window_bounds = array<i64: 2, 8, 128>}, {transform_indices = @transform_7, window_bounds = array<i64: 2, 8, 128>}]} {
    %c0 = arith.constant 0 : index
    %c0_0 = arith.constant 0 : index
    %c0_1 = arith.constant 0 : index
    %0 = vector.load %arg5[%c0, %c0_0, %c0_1] : memref<1x128x512xf32, #tpu.memory_space<vmem>>, vector<1x128x512xf32>
    %1 = vector.shape_cast %0 : vector<1x128x512xf32> to vector<128x512xf32>
    %c0_2 = arith.constant 0 : index
    %c0_3 = arith.constant 0 : index
    %c0_4 = arith.constant 0 : index
    %2 = vector.load %arg6[%c0_2, %c0_3, %c0_4] : memref<1x1x512xf32, #tpu.memory_space<vmem>>, vector<1x1x512xf32>
    %3 = vector.shape_cast %2 : vector<1x1x512xf32> to vector<1x512xf32>
    %c0_i32 = arith.constant 0 : i32
    %4 = arith.cmpi eq, %arg1, %c0_i32 : i32
    %5 = arith.extui %4 : i1 to i32
    %c0_i32_5 = arith.constant 0 : i32
    %6 = arith.cmpi ne, %5, %c0_i32_5 : i32
    scf.if %6 {
      %c0_78 = arith.constant 0 : index
      %c0_79 = arith.constant 0 : index
      %c0_80 = arith.constant 0 : index
      %260 = vector.load %arg2[%c0_78, %c0_79, %c0_80] : memref<1x64x16xf32, #tpu.memory_space<vmem>>, vector<1x64x16xf32>
      %261 = vector.shape_cast %260 : vector<1x64x16xf32> to vector<64x16xf32>
      %c0_81 = arith.constant 0 : index
      %c0_82 = arith.constant 0 : index
      %262 = vector.load %arg3[%c0_81, %c0_82] : memref<16x512xf32, #tpu.memory_space<vmem>>, vector<16x512xf32>
      %cst_83 = arith.constant dense<0.000000e+00> : vector<64x512xf32>
      %263 = tpu.matmul %261, %262, %cst_83 {dimension_numbers = #tpu.dot_dimension_numbers<[1], [0], [0], [1], [0, 0, 1, 1], [], []>} : vector<64x16xf32>, vector<16x512xf32>, vector<64x512xf32> -> vector<64x512xf32>
      %264 = vector.broadcast %3 : vector<1x512xf32> to vector<64x512xf32>
      %265 = arith.addf %263, %264 : vector<64x512xf32>
      %c0_84 = arith.constant 0 : index
      %c0_85 = arith.constant 0 : index
      %266 = vector.load %arg10[%c0_84, %c0_85] : memref<64x512xf32, #tpu.memory_space<vmem>>, vector<64x512xf32>
      tpu.vector_store %arg10[%c0_84, %c0_85], %265 {strides = array<i32>} : memref<64x512xf32, #tpu.memory_space<vmem>>, vector<64x512xf32>,
    } else {
    }
    %c0_i32_6 = arith.constant 0 : i32
    %7 = arith.cmpi sgt, %arg1, %c0_i32_6 : i32
    %8 = arith.extui %7 : i1 to i32
    %c0_i32_7 = arith.constant 0 : i32
    %9 = arith.cmpi ne, %8, %c0_i32_7 : i32
    scf.if %9 {
      %c0_78 = arith.constant 0 : index
      %c0_79 = arith.constant 0 : index
      %c0_80 = arith.constant 0 : index
      %260 = vector.load %arg7[%c0_78, %c0_79, %c0_80] : memref<1x64x128xf32, #tpu.memory_space<vmem>>, vector<1x64x128xf32>
      %261 = vector.shape_cast %260 : vector<1x64x128xf32> to vector<64x128xf32>
      %c0_81 = arith.constant 0 : index
      %c0_82 = arith.constant 0 : index
      %c0_83 = arith.constant 0 : index
      %262 = vector.load %arg4[%c0_81, %c0_82, %c0_83] : memref<1x128x512xf32, #tpu.memory_space<vmem>>, vector<1x128x512xf32>
      %263 = vector.shape_cast %262 : vector<1x128x512xf32> to vector<128x512xf32>
      %cst_84 = arith.constant dense<0.000000e+00> : vector<64x512xf32>
      %264 = tpu.matmul %261, %263, %cst_84 {dimension_numbers = #tpu.dot_dimension_numbers<[1], [0], [0], [1], [0, 0, 1, 1], [], []>} : vector<64x128xf32>, vector<128x512xf32>, vector<64x512xf32> -> vector<64x512xf32>
      %265 = vector.broadcast %3 : vector<1x512xf32> to vector<64x512xf32>
      %266 = arith.addf %264, %265 : vector<64x512xf32>
      %c0_85 = arith.constant 0 : index
      %c0_86 = arith.constant 0 : index
      %267 = vector.load %arg10[%c0_85, %c0_86] : memref<64x512xf32, #tpu.memory_space<vmem>>, vector<64x512xf32>
      tpu.vector_store %arg10[%c0_85, %c0_86], %266 {strides = array<i32>} : memref<64x512xf32, #tpu.memory_space<vmem>>, vector<64x512xf32>,
    } else {
    }
    %cst = arith.constant 0.000000e+00 : f32
    %10 = vector.broadcast %cst : f32 to vector<8x128xf32>
    %cst_8 = arith.constant 0.000000e+00 : f32
    %11 = vector.broadcast %cst_8 : f32 to vector<8x128xf32>
    %c0_i32_9 = arith.constant 0 : i32
    %c8_i32 = arith.constant 8 : i32
    %12 = arith.muli %c0_i32_9, %c8_i32 : i32
    %13 = tpu.assume_multiple %12, 8 : i32
    %14 = arith.index_cast %13 : i32 to index
    %c0_10 = arith.constant 0 : index
    %15 = vector.load %arg10[%14, %c0_10] : memref<64x512xf32, #tpu.memory_space<vmem>>, vector<8x512xf32>
    %cst_11 = arith.constant dense<0.000000e+00> : vector<8x512xf32>
    %16 = tpu.matmul %10, %1, %cst_11 {dimension_numbers = #tpu.dot_dimension_numbers<[1], [0], [0], [1], [0, 0, 1, 1], [], []>} : vector<8x128xf32>, vector<128x512xf32>, vector<8x512xf32> -> vector<8x512xf32>
    %17 = arith.addf %15, %16 : vector<8x512xf32>
    %18 = vector.extract_strided_slice %17 {offsets = [0, 0], sizes = [8, 128], strides = [1, 1]} : vector<8x512xf32> to vector<8x128xf32>
    %19 = math.exp %18 : vector<8x128xf32>
    %20 = vector.extract_strided_slice %17 {offsets = [0, 128], sizes = [8, 128], strides = [1, 1]} : vector<8x512xf32> to vector<8x128xf32>
    %21 = math.exp %20 : vector<8x128xf32>
    %22 = vector.extract_strided_slice %17 {offsets = [0, 256], sizes = [8, 128], strides = [1, 1]} : vector<8x512xf32> to vector<8x128xf32>
    %23 = math.tanh %22 : vector<8x128xf32>
    %24 = vector.extract_strided_slice %17 {offsets = [0, 384], sizes = [8, 128], strides = [1, 1]} : vector<8x512xf32> to vector<8x128xf32>
    %25 = arith.negf %24 : vector<8x128xf32>
    %26 = math.exp %25 : vector<8x128xf32>
    %cst_12 = arith.constant 1.000000e+00 : f32
    %27 = vector.broadcast %cst_12 : f32 to vector<8x128xf32>
    %28 = arith.addf %27, %26 : vector<8x128xf32>
    %29 = arith.divf %27, %28 : vector<8x128xf32>
    %30 = arith.mulf %21, %11 : vector<8x128xf32>
    %31 = arith.mulf %19, %23 : vector<8x128xf32>
    %32 = arith.addf %30, %31 : vector<8x128xf32>
    %33 = math.tanh %32 : vector<8x128xf32>
    %34 = arith.mulf %29, %33 : vector<8x128xf32>
    %c0_i32_13 = arith.constant 0 : i32
    %35 = arith.addi %c0_i32_13, %c0_i32_9 : i32
    %c8_i32_14 = arith.constant 8 : i32
    %36 = arith.muli %35, %c8_i32_14 : i32
    %37 = tpu.assume_multiple %36, 8 : i32
    %c0_15 = arith.constant 0 : index
    %38 = arith.index_cast %37 : i32 to index
    %c0_16 = arith.constant 0 : index
    %39 = vector.load %arg7[%c0_15, %38, %c0_16] : memref<1x64x128xf32, #tpu.memory_space<vmem>>, vector<1x8x128xf32>
    %40 = vector.shape_cast %39 : vector<1x8x128xf32> to vector<8x128xf32>
    %41 = vector.shape_cast %34 : vector<8x128xf32> to vector<1x8x128xf32>
    tpu.vector_store %arg7[%c0_15, %38, %c0_16], %41 {strides = array<i32>} : memref<1x64x128xf32, #tpu.memory_space<vmem>>, vector<1x8x128xf32>,
    %c1_i32 = arith.constant 1 : i32
    %c8_i32_17 = arith.constant 8 : i32
    %42 = arith.muli %c1_i32, %c8_i32_17 : i32
    %43 = tpu.assume_multiple %42, 8 : i32
    %44 = arith.index_cast %43 : i32 to index
    %c0_18 = arith.constant 0 : index
    %45 = vector.load %arg10[%44, %c0_18] : memref<64x512xf32, #tpu.memory_space<vmem>>, vector<8x512xf32>
    %cst_19 = arith.constant dense<0.000000e+00> : vector<8x512xf32>
    %46 = tpu.matmul %34, %1, %cst_19 {dimension_numbers = #tpu.dot_dimension_numbers<[1], [0], [0], [1], [0, 0, 1, 1], [], []>} : vector<8x128xf32>, vector<128x512xf32>, vector<8x512xf32> -> vector<8x512xf32>
    %47 = arith.addf %45, %46 : vector<8x512xf32>
    %48 = vector.extract_strided_slice %47 {offsets = [0, 0], sizes = [8, 128], strides = [1, 1]} : vector<8x512xf32> to vector<8x128xf32>
    %49 = math.exp %48 : vector<8x128xf32>
    %50 = vector.extract_strided_slice %47 {offsets = [0, 128], sizes = [8, 128], strides = [1, 1]} : vector<8x512xf32> to vector<8x128xf32>
    %51 = math.exp %50 : vector<8x128xf32>
    %52 = vector.extract_strided_slice %47 {offsets = [0, 256], sizes = [8, 128], strides = [1, 1]} : vector<8x512xf32> to vector<8x128xf32>
    %53 = math.tanh %52 : vector<8x128xf32>
    %54 = vector.extract_strided_slice %47 {offsets = [0, 384], sizes = [8, 128], strides = [1, 1]} : vector<8x512xf32> to vector<8x128xf32>
    %55 = arith.negf %54 : vector<8x128xf32>
    %56 = math.exp %55 : vector<8x128xf32>
    %cst_20 = arith.constant 1.000000e+00 : f32
    %57 = vector.broadcast %cst_20 : f32 to vector<8x128xf32>
    %58 = arith.addf %57, %56 : vector<8x128xf32>
    %59 = arith.divf %57, %58 : vector<8x128xf32>
    %60 = arith.mulf %51, %32 : vector<8x128xf32>
    %61 = arith.mulf %49, %53 : vector<8x128xf32>
    %62 = arith.addf %60, %61 : vector<8x128xf32>
    %63 = math.tanh %62 : vector<8x128xf32>
    %64 = arith.mulf %59, %63 : vector<8x128xf32>
    %c0_i32_21 = arith.constant 0 : i32
    %65 = arith.addi %c0_i32_21, %c1_i32 : i32
    %c8_i32_22 = arith.constant 8 : i32
    %66 = arith.muli %65, %c8_i32_22 : i32
    %67 = tpu.assume_multiple %66, 8 : i32
    %c0_23 = arith.constant 0 : index
    %68 = arith.index_cast %67 : i32 to index
    %c0_24 = arith.constant 0 : index
    %69 = vector.load %arg7[%c0_23, %68, %c0_24] : memref<1x64x128xf32, #tpu.memory_space<vmem>>, vector<1x8x128xf32>
    %70 = vector.shape_cast %69 : vector<1x8x128xf32> to vector<8x128xf32>
    %71 = vector.shape_cast %64 : vector<8x128xf32> to vector<1x8x128xf32>
    tpu.vector_store %arg7[%c0_23, %68, %c0_24], %71 {strides = array<i32>} : memref<1x64x128xf32, #tpu.memory_space<vmem>>, vector<1x8x128xf32>,
    %c2_i32 = arith.constant 2 : i32
    %c8_i32_25 = arith.constant 8 : i32
    %72 = arith.muli %c2_i32, %c8_i32_25 : i32
    %73 = tpu.assume_multiple %72, 8 : i32
    %74 = arith.index_cast %73 : i32 to index
    %c0_26 = arith.constant 0 : index
    %75 = vector.load %arg10[%74, %c0_26] : memref<64x512xf32, #tpu.memory_space<vmem>>, vector<8x512xf32>
    %cst_27 = arith.constant dense<0.000000e+00> : vector<8x512xf32>
    %76 = tpu.matmul %64, %1, %cst_27 {dimension_numbers = #tpu.dot_dimension_numbers<[1], [0], [0], [1], [0, 0, 1, 1], [], []>} : vector<8x128xf32>, vector<128x512xf32>, vector<8x512xf32> -> vector<8x512xf32>
    %77 = arith.addf %75, %76 : vector<8x512xf32>
    %78 = vector.extract_strided_slice %77 {offsets = [0, 0], sizes = [8, 128], strides = [1, 1]} : vector<8x512xf32> to vector<8x128xf32>
    %79 = math.exp %78 : vector<8x128xf32>
    %80 = vector.extract_strided_slice %77 {offsets = [0, 128], sizes = [8, 128], strides = [1, 1]} : vector<8x512xf32> to vector<8x128xf32>
    %81 = math.exp %80 : vector<8x128xf32>
    %82 = vector.extract_strided_slice %77 {offsets = [0, 256], sizes = [8, 128], strides = [1, 1]} : vector<8x512xf32> to vector<8x128xf32>
    %83 = math.tanh %82 : vector<8x128xf32>
    %84 = vector.extract_strided_slice %77 {offsets = [0, 384], sizes = [8, 128], strides = [1, 1]} : vector<8x512xf32> to vector<8x128xf32>
    %85 = arith.negf %84 : vector<8x128xf32>
    %86 = math.exp %85 : vector<8x128xf32>
    %cst_28 = arith.constant 1.000000e+00 : f32
    %87 = vector.broadcast %cst_28 : f32 to vector<8x128xf32>
    %88 = arith.addf %87, %86 : vector<8x128xf32>
    %89 = arith.divf %87, %88 : vector<8x128xf32>
    %90 = arith.mulf %81, %62 : vector<8x128xf32>
    %91 = arith.mulf %79, %83 : vector<8x128xf32>
    %92 = arith.addf %90, %91 : vector<8x128xf32>
    %93 = math.tanh %92 : vector<8x128xf32>
    %94 = arith.mulf %89, %93 : vector<8x128xf32>
    %c0_i32_29 = arith.constant 0 : i32
    %95 = arith.addi %c0_i32_29, %c2_i32 : i32
    %c8_i32_30 = arith.constant 8 : i32
    %96 = arith.muli %95, %c8_i32_30 : i32
    %97 = tpu.assume_multiple %96, 8 : i32
    %c0_31 = arith.constant 0 : index
    %98 = arith.index_cast %97 : i32 to index
    %c0_32 = arith.constant 0 : index
    %99 = vector.load %arg7[%c0_31, %98, %c0_32] : memref<1x64x128xf32, #tpu.memory_space<vmem>>, vector<1x8x128xf32>
    %100 = vector.shape_cast %99 : vector<1x8x128xf32> to vector<8x128xf32>
    %101 = vector.shape_cast %94 : vector<8x128xf32> to vector<1x8x128xf32>
    tpu.vector_store %arg7[%c0_31, %98, %c0_32], %101 {strides = array<i32>} : memref<1x64x128xf32, #tpu.memory_space<vmem>>, vector<1x8x128xf32>,
    %c3_i32 = arith.constant 3 : i32
    %c8_i32_33 = arith.constant 8 : i32
    %102 = arith.muli %c3_i32, %c8_i32_33 : i32
    %103 = tpu.assume_multiple %102, 8 : i32
    %104 = arith.index_cast %103 : i32 to index
    %c0_34 = arith.constant 0 : index
    %105 = vector.load %arg10[%104, %c0_34] : memref<64x512xf32, #tpu.memory_space<vmem>>, vector<8x512xf32>
    %cst_35 = arith.constant dense<0.000000e+00> : vector<8x512xf32>
    %106 = tpu.matmul %94, %1, %cst_35 {dimension_numbers = #tpu.dot_dimension_numbers<[1], [0], [0], [1], [0, 0, 1, 1], [], []>} : vector<8x128xf32>, vector<128x512xf32>, vector<8x512xf32> -> vector<8x512xf32>
    %107 = arith.addf %105, %106 : vector<8x512xf32>
    %108 = vector.extract_strided_slice %107 {offsets = [0, 0], sizes = [8, 128], strides = [1, 1]} : vector<8x512xf32> to vector<8x128xf32>
    %109 = math.exp %108 : vector<8x128xf32>
    %110 = vector.extract_strided_slice %107 {offsets = [0, 128], sizes = [8, 128], strides = [1, 1]} : vector<8x512xf32> to vector<8x128xf32>
    %111 = math.exp %110 : vector<8x128xf32>
    %112 = vector.extract_strided_slice %107 {offsets = [0, 256], sizes = [8, 128], strides = [1, 1]} : vector<8x512xf32> to vector<8x128xf32>
    %113 = math.tanh %112 : vector<8x128xf32>
    %114 = vector.extract_strided_slice %107 {offsets = [0, 384], sizes = [8, 128], strides = [1, 1]} : vector<8x512xf32> to vector<8x128xf32>
    %115 = arith.negf %114 : vector<8x128xf32>
    %116 = math.exp %115 : vector<8x128xf32>
    %cst_36 = arith.constant 1.000000e+00 : f32
    %117 = vector.broadcast %cst_36 : f32 to vector<8x128xf32>
    %118 = arith.addf %117, %116 : vector<8x128xf32>
    %119 = arith.divf %117, %118 : vector<8x128xf32>
    %120 = arith.mulf %111, %92 : vector<8x128xf32>
    %121 = arith.mulf %109, %113 : vector<8x128xf32>
    %122 = arith.addf %120, %121 : vector<8x128xf32>
    %123 = math.tanh %122 : vector<8x128xf32>
    %124 = arith.mulf %119, %123 : vector<8x128xf32>
    %c0_i32_37 = arith.constant 0 : i32
    %125 = arith.addi %c0_i32_37, %c3_i32 : i32
    %c8_i32_38 = arith.constant 8 : i32
    %126 = arith.muli %125, %c8_i32_38 : i32
    %127 = tpu.assume_multiple %126, 8 : i32
    %c0_39 = arith.constant 0 : index
    %128 = arith.index_cast %127 : i32 to index
    %c0_40 = arith.constant 0 : index
    %129 = vector.load %arg7[%c0_39, %128, %c0_40] : memref<1x64x128xf32, #tpu.memory_space<vmem>>, vector<1x8x128xf32>
    %130 = vector.shape_cast %129 : vector<1x8x128xf32> to vector<8x128xf32>
    %131 = vector.shape_cast %124 : vector<8x128xf32> to vector<1x8x128xf32>
    tpu.vector_store %arg7[%c0_39, %128, %c0_40], %131 {strides = array<i32>} : memref<1x64x128xf32, #tpu.memory_space<vmem>>, vector<1x8x128xf32>,
    %c4_i32 = arith.constant 4 : i32
    %c8_i32_41 = arith.constant 8 : i32
    %132 = arith.muli %c4_i32, %c8_i32_41 : i32
    %133 = tpu.assume_multiple %132, 8 : i32
    %134 = arith.index_cast %133 : i32 to index
    %c0_42 = arith.constant 0 : index
    %135 = vector.load %arg10[%134, %c0_42] : memref<64x512xf32, #tpu.memory_space<vmem>>, vector<8x512xf32>
    %cst_43 = arith.constant dense<0.000000e+00> : vector<8x512xf32>
    %136 = tpu.matmul %124, %1, %cst_43 {dimension_numbers = #tpu.dot_dimension_numbers<[1], [0], [0], [1], [0, 0, 1, 1], [], []>} : vector<8x128xf32>, vector<128x512xf32>, vector<8x512xf32> -> vector<8x512xf32>
    %137 = arith.addf %135, %136 : vector<8x512xf32>
    %138 = vector.extract_strided_slice %137 {offsets = [0, 0], sizes = [8, 128], strides = [1, 1]} : vector<8x512xf32> to vector<8x128xf32>
    %139 = math.exp %138 : vector<8x128xf32>
    %140 = vector.extract_strided_slice %137 {offsets = [0, 128], sizes = [8, 128], strides = [1, 1]} : vector<8x512xf32> to vector<8x128xf32>
    %141 = math.exp %140 : vector<8x128xf32>
    %142 = vector.extract_strided_slice %137 {offsets = [0, 256], sizes = [8, 128], strides = [1, 1]} : vector<8x512xf32> to vector<8x128xf32>
    %143 = math.tanh %142 : vector<8x128xf32>
    %144 = vector.extract_strided_slice %137 {offsets = [0, 384], sizes = [8, 128], strides = [1, 1]} : vector<8x512xf32> to vector<8x128xf32>
    %145 = arith.negf %144 : vector<8x128xf32>
    %146 = math.exp %145 : vector<8x128xf32>
    %cst_44 = arith.constant 1.000000e+00 : f32
    %147 = vector.broadcast %cst_44 : f32 to vector<8x128xf32>
    %148 = arith.addf %147, %146 : vector<8x128xf32>
    %149 = arith.divf %147, %148 : vector<8x128xf32>
    %150 = arith.mulf %141, %122 : vector<8x128xf32>
    %151 = arith.mulf %139, %143 : vector<8x128xf32>
    %152 = arith.addf %150, %151 : vector<8x128xf32>
    %153 = math.tanh %152 : vector<8x128xf32>
    %154 = arith.mulf %149, %153 : vector<8x128xf32>
    %c0_i32_45 = arith.constant 0 : i32
    %155 = arith.addi %c0_i32_45, %c4_i32 : i32
    %c8_i32_46 = arith.constant 8 : i32
    %156 = arith.muli %155, %c8_i32_46 : i32
    %157 = tpu.assume_multiple %156, 8 : i32
    %c0_47 = arith.constant 0 : index
    %158 = arith.index_cast %157 : i32 to index
    %c0_48 = arith.constant 0 : index
    %159 = vector.load %arg7[%c0_47, %158, %c0_48] : memref<1x64x128xf32, #tpu.memory_space<vmem>>, vector<1x8x128xf32>
    %160 = vector.shape_cast %159 : vector<1x8x128xf32> to vector<8x128xf32>
    %161 = vector.shape_cast %154 : vector<8x128xf32> to vector<1x8x128xf32>
    tpu.vector_store %arg7[%c0_47, %158, %c0_48], %161 {strides = array<i32>} : memref<1x64x128xf32, #tpu.memory_space<vmem>>, vector<1x8x128xf32>,
    %c5_i32 = arith.constant 5 : i32
    %c8_i32_49 = arith.constant 8 : i32
    %162 = arith.muli %c5_i32, %c8_i32_49 : i32
    %163 = tpu.assume_multiple %162, 8 : i32
    %164 = arith.index_cast %163 : i32 to index
    %c0_50 = arith.constant 0 : index
    %165 = vector.load %arg10[%164, %c0_50] : memref<64x512xf32, #tpu.memory_space<vmem>>, vector<8x512xf32>
    %cst_51 = arith.constant dense<0.000000e+00> : vector<8x512xf32>
    %166 = tpu.matmul %154, %1, %cst_51 {dimension_numbers = #tpu.dot_dimension_numbers<[1], [0], [0], [1], [0, 0, 1, 1], [], []>} : vector<8x128xf32>, vector<128x512xf32>, vector<8x512xf32> -> vector<8x512xf32>
    %167 = arith.addf %165, %166 : vector<8x512xf32>
    %168 = vector.extract_strided_slice %167 {offsets = [0, 0], sizes = [8, 128], strides = [1, 1]} : vector<8x512xf32> to vector<8x128xf32>
    %169 = math.exp %168 : vector<8x128xf32>
    %170 = vector.extract_strided_slice %167 {offsets = [0, 128], sizes = [8, 128], strides = [1, 1]} : vector<8x512xf32> to vector<8x128xf32>
    %171 = math.exp %170 : vector<8x128xf32>
    %172 = vector.extract_strided_slice %167 {offsets = [0, 256], sizes = [8, 128], strides = [1, 1]} : vector<8x512xf32> to vector<8x128xf32>
    %173 = math.tanh %172 : vector<8x128xf32>
    %174 = vector.extract_strided_slice %167 {offsets = [0, 384], sizes = [8, 128], strides = [1, 1]} : vector<8x512xf32> to vector<8x128xf32>
    %175 = arith.negf %174 : vector<8x128xf32>
    %176 = math.exp %175 : vector<8x128xf32>
    %cst_52 = arith.constant 1.000000e+00 : f32
    %177 = vector.broadcast %cst_52 : f32 to vector<8x128xf32>
    %178 = arith.addf %177, %176 : vector<8x128xf32>
    %179 = arith.divf %177, %178 : vector<8x128xf32>
    %180 = arith.mulf %171, %152 : vector<8x128xf32>
    %181 = arith.mulf %169, %173 : vector<8x128xf32>
    %182 = arith.addf %180, %181 : vector<8x128xf32>
    %183 = math.tanh %182 : vector<8x128xf32>
    %184 = arith.mulf %179, %183 : vector<8x128xf32>
    %c0_i32_53 = arith.constant 0 : i32
    %185 = arith.addi %c0_i32_53, %c5_i32 : i32
    %c8_i32_54 = arith.constant 8 : i32
    %186 = arith.muli %185, %c8_i32_54 : i32
    %187 = tpu.assume_multiple %186, 8 : i32
    %c0_55 = arith.constant 0 : index
    %188 = arith.index_cast %187 : i32 to index
    %c0_56 = arith.constant 0 : index
    %189 = vector.load %arg7[%c0_55, %188, %c0_56] : memref<1x64x128xf32, #tpu.memory_space<vmem>>, vector<1x8x128xf32>
    %190 = vector.shape_cast %189 : vector<1x8x128xf32> to vector<8x128xf32>
    %191 = vector.shape_cast %184 : vector<8x128xf32> to vector<1x8x128xf32>
    tpu.vector_store %arg7[%c0_55, %188, %c0_56], %191 {strides = array<i32>} : memref<1x64x128xf32, #tpu.memory_space<vmem>>, vector<1x8x128xf32>,
    %c6_i32 = arith.constant 6 : i32
    %c8_i32_57 = arith.constant 8 : i32
    %192 = arith.muli %c6_i32, %c8_i32_57 : i32
    %193 = tpu.assume_multiple %192, 8 : i32
    %194 = arith.index_cast %193 : i32 to index
    %c0_58 = arith.constant 0 : index
    %195 = vector.load %arg10[%194, %c0_58] : memref<64x512xf32, #tpu.memory_space<vmem>>, vector<8x512xf32>
    %cst_59 = arith.constant dense<0.000000e+00> : vector<8x512xf32>
    %196 = tpu.matmul %184, %1, %cst_59 {dimension_numbers = #tpu.dot_dimension_numbers<[1], [0], [0], [1], [0, 0, 1, 1], [], []>} : vector<8x128xf32>, vector<128x512xf32>, vector<8x512xf32> -> vector<8x512xf32>
    %197 = arith.addf %195, %196 : vector<8x512xf32>
    %198 = vector.extract_strided_slice %197 {offsets = [0, 0], sizes = [8, 128], strides = [1, 1]} : vector<8x512xf32> to vector<8x128xf32>
    %199 = math.exp %198 : vector<8x128xf32>
    %200 = vector.extract_strided_slice %197 {offsets = [0, 128], sizes = [8, 128], strides = [1, 1]} : vector<8x512xf32> to vector<8x128xf32>
    %201 = math.exp %200 : vector<8x128xf32>
    %202 = vector.extract_strided_slice %197 {offsets = [0, 256], sizes = [8, 128], strides = [1, 1]} : vector<8x512xf32> to vector<8x128xf32>
    %203 = math.tanh %202 : vector<8x128xf32>
    %204 = vector.extract_strided_slice %197 {offsets = [0, 384], sizes = [8, 128], strides = [1, 1]} : vector<8x512xf32> to vector<8x128xf32>
    %205 = arith.negf %204 : vector<8x128xf32>
    %206 = math.exp %205 : vector<8x128xf32>
    %cst_60 = arith.constant 1.000000e+00 : f32
    %207 = vector.broadcast %cst_60 : f32 to vector<8x128xf32>
    %208 = arith.addf %207, %206 : vector<8x128xf32>
    %209 = arith.divf %207, %208 : vector<8x128xf32>
    %210 = arith.mulf %201, %182 : vector<8x128xf32>
    %211 = arith.mulf %199, %203 : vector<8x128xf32>
    %212 = arith.addf %210, %211 : vector<8x128xf32>
    %213 = math.tanh %212 : vector<8x128xf32>
    %214 = arith.mulf %209, %213 : vector<8x128xf32>
    %c0_i32_61 = arith.constant 0 : i32
    %215 = arith.addi %c0_i32_61, %c6_i32 : i32
    %c8_i32_62 = arith.constant 8 : i32
    %216 = arith.muli %215, %c8_i32_62 : i32
    %217 = tpu.assume_multiple %216, 8 : i32
    %c0_63 = arith.constant 0 : index
    %218 = arith.index_cast %217 : i32 to index
    %c0_64 = arith.constant 0 : index
    %219 = vector.load %arg7[%c0_63, %218, %c0_64] : memref<1x64x128xf32, #tpu.memory_space<vmem>>, vector<1x8x128xf32>
    %220 = vector.shape_cast %219 : vector<1x8x128xf32> to vector<8x128xf32>
    %221 = vector.shape_cast %214 : vector<8x128xf32> to vector<1x8x128xf32>
    tpu.vector_store %arg7[%c0_63, %218, %c0_64], %221 {strides = array<i32>} : memref<1x64x128xf32, #tpu.memory_space<vmem>>, vector<1x8x128xf32>,
    %c7_i32 = arith.constant 7 : i32
    %c8_i32_65 = arith.constant 8 : i32
    %222 = arith.muli %c7_i32, %c8_i32_65 : i32
    %223 = tpu.assume_multiple %222, 8 : i32
    %224 = arith.index_cast %223 : i32 to index
    %c0_66 = arith.constant 0 : index
    %225 = vector.load %arg10[%224, %c0_66] : memref<64x512xf32, #tpu.memory_space<vmem>>, vector<8x512xf32>
    %cst_67 = arith.constant dense<0.000000e+00> : vector<8x512xf32>
    %226 = tpu.matmul %214, %1, %cst_67 {dimension_numbers = #tpu.dot_dimension_numbers<[1], [0], [0], [1], [0, 0, 1, 1], [], []>} : vector<8x128xf32>, vector<128x512xf32>, vector<8x512xf32> -> vector<8x512xf32>
    %227 = arith.addf %225, %226 : vector<8x512xf32>
    %228 = vector.extract_strided_slice %227 {offsets = [0, 0], sizes = [8, 128], strides = [1, 1]} : vector<8x512xf32> to vector<8x128xf32>
    %229 = math.exp %228 : vector<8x128xf32>
    %230 = vector.extract_strided_slice %227 {offsets = [0, 128], sizes = [8, 128], strides = [1, 1]} : vector<8x512xf32> to vector<8x128xf32>
    %231 = math.exp %230 : vector<8x128xf32>
    %232 = vector.extract_strided_slice %227 {offsets = [0, 256], sizes = [8, 128], strides = [1, 1]} : vector<8x512xf32> to vector<8x128xf32>
    %233 = math.tanh %232 : vector<8x128xf32>
    %234 = vector.extract_strided_slice %227 {offsets = [0, 384], sizes = [8, 128], strides = [1, 1]} : vector<8x512xf32> to vector<8x128xf32>
    %235 = arith.negf %234 : vector<8x128xf32>
    %236 = math.exp %235 : vector<8x128xf32>
    %cst_68 = arith.constant 1.000000e+00 : f32
    %237 = vector.broadcast %cst_68 : f32 to vector<8x128xf32>
    %238 = arith.addf %237, %236 : vector<8x128xf32>
    %239 = arith.divf %237, %238 : vector<8x128xf32>
    %240 = arith.mulf %231, %212 : vector<8x128xf32>
    %241 = arith.mulf %229, %233 : vector<8x128xf32>
    %242 = arith.addf %240, %241 : vector<8x128xf32>
    %243 = math.tanh %242 : vector<8x128xf32>
    %244 = arith.mulf %239, %243 : vector<8x128xf32>
    %c0_i32_69 = arith.constant 0 : i32
    %245 = arith.addi %c0_i32_69, %c7_i32 : i32
    %c8_i32_70 = arith.constant 8 : i32
    %246 = arith.muli %245, %c8_i32_70 : i32
    %247 = tpu.assume_multiple %246, 8 : i32
    %c0_71 = arith.constant 0 : index
    %248 = arith.index_cast %247 : i32 to index
    %c0_72 = arith.constant 0 : index
    %249 = vector.load %arg7[%c0_71, %248, %c0_72] : memref<1x64x128xf32, #tpu.memory_space<vmem>>, vector<1x8x128xf32>
    %250 = vector.shape_cast %249 : vector<1x8x128xf32> to vector<8x128xf32>
    %251 = vector.shape_cast %244 : vector<8x128xf32> to vector<1x8x128xf32>
    tpu.vector_store %arg7[%c0_71, %248, %c0_72], %251 {strides = array<i32>} : memref<1x64x128xf32, #tpu.memory_space<vmem>>, vector<1x8x128xf32>,
    %c8_i32_73 = arith.constant 8 : i32
    %252 = arith.index_cast %arg1 : i32 to index
    %c0_74 = arith.constant 0 : index
    %c0_75 = arith.constant 0 : index
    %253 = vector.load %arg8[%252, %c0_74, %c0_75] : memref<2x8x128xf32, #tpu.memory_space<vmem>>, vector<1x8x128xf32>
    %254 = vector.shape_cast %253 : vector<1x8x128xf32> to vector<8x128xf32>
    %255 = vector.shape_cast %244 : vector<8x128xf32> to vector<1x8x128xf32>
    tpu.vector_store %arg8[%252, %c0_74, %c0_75], %255 {strides = array<i32>} : memref<2x8x128xf32, #tpu.memory_space<vmem>>, vector<1x8x128xf32>,
    %256 = arith.index_cast %arg1 : i32 to index
    %c0_76 = arith.constant 0 : index
    %c0_77 = arith.constant 0 : index
    %257 = vector.load %arg9[%256, %c0_76, %c0_77] : memref<2x8x128xf32, #tpu.memory_space<vmem>>, vector<1x8x128xf32>
    %258 = vector.shape_cast %257 : vector<1x8x128xf32> to vector<8x128xf32>
    %259 = vector.shape_cast %242 : vector<8x128xf32> to vector<1x8x128xf32>
    tpu.vector_store %arg9[%256, %c0_76, %c0_77], %259 {strides = array<i32>} : memref<2x8x128xf32, #tpu.memory_space<vmem>>, vector<1x8x128xf32>,
    return
  }
  func.func @transform_0(%arg0: i32, %arg1: i32) -> (i32, i32, i32) {
    %c0_i32 = arith.constant 0 : i32
    %c0_i32_0 = arith.constant 0 : i32
    %c0_i32_1 = arith.constant 0 : i32
    return %arg0, %c0_i32, %c0_i32_0 : i32, i32, i32
  }
  func.func @transform_1(%arg0: i32, %arg1: i32) -> (i32, i32) {
    %c0_i32 = arith.constant 0 : i32
    %c0_i32_0 = arith.constant 0 : i32
    %c0_i32_1 = arith.constant 0 : i32
    return %c0_i32, %c0_i32_0 : i32, i32
  }
  func.func @transform_2(%arg0: i32, %arg1: i32) -> (i32, i32, i32) {
    %c1_i32 = arith.constant 1 : i32
    %0 = arith.subi %arg1, %c1_i32 : i32
    %c0_i32 = arith.constant 0 : i32
    %1 = arith.maxsi %0, %c0_i32 : i32
    %c0_i32_0 = arith.constant 0 : i32
    %c0_i32_1 = arith.constant 0 : i32
    %c0_i32_2 = arith.constant 0 : i32
    return %1, %c0_i32_0, %c0_i32_1 : i32, i32, i32
  }
  func.func @transform_3(%arg0: i32, %arg1: i32) -> (i32, i32, i32) {
    %c0_i32 = arith.constant 0 : i32
    %c0_i32_0 = arith.constant 0 : i32
    %c0_i32_1 = arith.constant 0 : i32
    return %arg1, %c0_i32, %c0_i32_0 : i32, i32, i32
  }
  func.func @transform_4(%arg0: i32, %arg1: i32) -> (i32, i32, i32) {
    %c0_i32 = arith.constant 0 : i32
    %c0_i32_0 = arith.constant 0 : i32
    %c0_i32_1 = arith.constant 0 : i32
    return %arg1, %c0_i32, %c0_i32_0 : i32, i32, i32
  }
  func.func @transform_5(%arg0: i32, %arg1: i32) -> (i32, i32, i32) {
    %c0_i32 = arith.constant 0 : i32
    %c0_i32_0 = arith.constant 0 : i32
    %c0_i32_1 = arith.constant 0 : i32
    return %arg0, %c0_i32, %c0_i32_0 : i32, i32, i32
  }
  func.func @transform_6(%arg0: i32, %arg1: i32) -> (i32, i32, i32) {
    %c0_i32 = arith.constant 0 : i32
    %c0_i32_0 = arith.constant 0 : i32
    %c0_i32_1 = arith.constant 0 : i32
    return %c0_i32, %arg0, %c0_i32_0 : i32, i32, i32
  }
  func.func @transform_7(%arg0: i32, %arg1: i32) -> (i32, i32, i32) {
    %c0_i32 = arith.constant 0 : i32
    %c0_i32_0 = arith.constant 0 : i32
    %c0_i32_1 = arith.constant 0 : i32
    return %c0_i32, %arg0, %c0_i32_0 : i32, i32, i32
  }
}

</mosaic_0001>

<bundles_post_ra>
// kernel: slstm_forward.1
= control target key start
LH: loop header
LB: loop body
LE: loop exit
PB: predicated region body
PF: predicated region fallthrough
CT: control target
= control target key end

     0   :  { %s2393_s24 = smov 0   ;;  %s2395_s25 = smov 0   ;;  %s3579_s0 = inlined_call_operand.vmem [shape: f32[1,64,16], index: 0, kind: input, shape index: {}]   ;;  %s3580_s1 = inlined_call_operand.vmem [shape: f32[16,512], index: 1, kind: input, shape index: {}]   ;;  %s3581_s2 = inlined_call_operand.vmem [shape: f32[1,128,512], index: 2, kind: input, shape index: {}]   ;;  %s3582_s3 = inlined_call_operand.vmem [shape: f32[2,128,512], index: 3, kind: input, shape index: {}]   ;;  %s3583_s4 = inlined_call_operand.vmem [shape: f32[2,1,512], index: 4, kind: input, shape index: {}]   ;;  %s3584_s5 = inlined_call_operand.vmem [shape: f32[1,64,128], index: 5, kind: output, shape index: {0}]   ;;  %s3585_s6 = inlined_call_operand.vmem [shape: f32[2,8,128], index: 6, kind: output, shape index: {1}]   ;;  %s3586_s7 = inlined_call_operand.vmem [shape: f32[2,8,128], index: 7, kind: output, shape index: {2}]  }
   0x1   :  { %s2397_s26 = smov 0  }
   0x2 LB: > { %s27_s27 = sadd.s32 1, %s2346_s25  ;;  %p2139_p0 = scmp.ge.s32.totalorder %s2350_s26, 1  ;;  %s2350_s26 = sphi %s2397_s26, %s18_s26   ;;  %s2346_s25 = sphi %s2395_s25, %s3780_s25   ;;  %s2342_s24 = sphi %s2393_s24, %s3779_s24  }
   0x3   : > { %p28_p1 = scmp.ge.s32.totalorder %s27_s27, 2  ;;  %p295_p2 = scmp.lt.s32.totalorder %s2350_s26, 3 }
   0x5   : > { %s3782_s27 = smov (%p28_p1, %s27_s27), 0  ;;  %p296_p3 = pnand %p2139_p0, %p295_p2 }
   0x7   : > { %299 = sbr.rel (%p296_p3) target bundleno = 1820 (0x71c), region = 40 }
   0xc   : > { %p368_p4 = scmp.lt.s32.totalorder %s2342_s24, 1  ;;  %p2151_p5 = scmp.ne.s32.totalorder %s2342_s24, 0 }
   0xe   : > { %s2415_s28 = scalar_select %p368_p4, %s2342_s24, 1 }
  0x10   : > { %s2206_s29 = sshll.u32 %s2415_s28, 9  ;;  %s2150_s10 = sshll.u32 %s2415_s28, 2 }
  0x11   : > { %s2421_s9 = scalar_lea.vmem %s3582_s3, %s2206_s29  ;;  %s376_s13 = scalar_lea.vmem %s3583_s4, %s2150_s10 }
  0x12   : > { %v2424_v0 = vld [vmem:[%s2421_s9] sm:$0xff]  ;;  %v2427_v1 = vld [vmem:[%s2421_s9 + $0x8] sm:$0xff]  ;;  %v2430_v2 = vld [vmem:[%s2421_s9 + $0x10] sm:$0xff] }
  0x13   : > { %3631 = vst [vmem:[#allocation4_spill] sm:$0xff] %v2424_v0  ;;  %v2433_v3 = vld [vmem:[%s2421_s9 + $0x18] sm:$0xff]  ;;  %v2436_v4 = vld [vmem:[%s2421_s9 + $0x20] sm:$0xff]  ;;  %v2439_v5 = vld [vmem:[%s2421_s9 + $0x28] sm:$0xff] }
  0x14   : > { %3632 = vst [vmem:[#allocation5_spill] sm:$0xff] %v2427_v1  ;;  %v2442_v6 = vld [vmem:[%s2421_s9 + $0x30] sm:$0xff]  ;;  %v2445_v7 = vld [vmem:[%s2421_s9 + $0x38] sm:$0xff]  ;;  %v2448_v8 = vld [vmem:[%s2421_s9 + $0x40] sm:$0xff] }
  0x15   : > { %3633 = vst [vmem:[#allocation6_spill] sm:$0xff] %v2430_v2  ;;  %v2451_v9 = vld [vmem:[%s2421_s9 + $0x48] sm:$0xff]  ;;  %v2454_v10 = vld [vmem:[%s2421_s9 + $0x50] sm:$0xff]  ;;  %v2457_v11 = vld [vmem:[%s2421_s9 + $0x58] sm:$0xff] }
  0x16   : > { %3634 = vst [vmem:[#allocation7_spill] sm:$0xff] %v2433_v3  ;;  %v2460_v12 = vld [vmem:[%s2421_s9 + $0x60] sm:$0xff]  ;;  %v2463_v13 = vld [vmem:[%s2421_s9 + $0x68] sm:$0xff]  ;;  %v2466_v14 = vld [vmem:[%s2421_s9 + $0x70] sm:$0xff] }
  0x17   : > { %3635 = vst [vmem:[#allocation8_spill] sm:$0xff] %v2436_v4  ;;  %v2469_v15 = vld [vmem:[%s2421_s9 + $0x78] sm:$0xff]  ;;  %v2472_v16 = vld [vmem:[%s2421_s9 + $0x80] sm:$0xff]  ;;  %v2475_v17 = vld [vmem:[%s2421_s9 + $0x88] sm:$0xff] }
  0x18   : > { %3636 = vst [vmem:[#allocation9_spill] sm:$0xff] %v2439_v5  ;;  %v2478_v18 = vld [vmem:[%s2421_s9 + $0x90] sm:$0xff]  ;;  %v2481_v19 = vld [vmem:[%s2421_s9 + $0x98] sm:$0xff]  ;;  %v2484_v20 = vld [vmem:[%s2421_s9 + $0xa0] sm:$0xff] }
  0x19   : > { %3637 = vst [vmem:[#allocation10_spill] sm:$0xff] %v2442_v6  ;;  %v2487_v21 = vld [vmem:[%s2421_s9 + $0xa8] sm:$0xff]  ;;  %v2490_v22 = vld [vmem:[%s2421_s9 + $0xb0] sm:$0xff]  ;;  %v2493_v23 = vld [vmem:[%s2421_s9 + $0xb8] sm:$0xff] }
  0x1a   : > { %3638 = vst [vmem:[#allocation11_spill] sm:$0xff] %v2445_v7  ;;  %v2496_v24 = vld [vmem:[%s2421_s9 + $0xc0] sm:$0xff]  ;;  %v2499_v25 = vld [vmem:[%s2421_s9 + $0xc8] sm:$0xff]  ;;  %v2502_v26 = vld [vmem:[%s2421_s9 + $0xd0] sm:$0xff] }
  0x1b   : > { %3639 = vst [vmem:[#allocation12_spill] sm:$0xff] %v2448_v8  ;;  %v2505_v27 = vld [vmem:[%s2421_s9 + $0xd8] sm:$0xff]  ;;  %v2508_v28 = vld [vmem:[%s2421_s9 + $0xe0] sm:$0xff]  ;;  %v2511_v29 = vld [vmem:[%s2421_s9 + $0xe8] sm:$0xff] }
  0x1c   : > { %3640 = vst [vmem:[#allocation13_spill] sm:$0xff] %v2451_v9  ;;  %v2514_v30 = vld [vmem:[%s2421_s9 + $0xf0] sm:$0xff]  ;;  %v2517_v31 = vld [vmem:[%s2421_s9 + $0xf8] sm:$0xff]  ;;  %v2520_v32 = vld [vmem:[%s2421_s9 + $0x100] sm:$0xff] }
  0x1d   : > { %3641 = vst [vmem:[#allocation14_spill] sm:$0xff] %v2454_v10  ;;  %v2523_v33 = vld [vmem:[%s2421_s9 + $0x108] sm:$0xff]  ;;  %v2526_v34 = vld [vmem:[%s2421_s9 + $0x110] sm:$0xff]  ;;  %v2529_v35 = vld [vmem:[%s2421_s9 + $0x118] sm:$0xff] }
  0x1e   : > { %3642 = vst [vmem:[#allocation15_spill] sm:$0xff] %v2457_v11  ;;  %v2532_v36 = vld [vmem:[%s2421_s9 + $0x120] sm:$0xff]  ;;  %v2535_v37 = vld [vmem:[%s2421_s9 + $0x128] sm:$0xff]  ;;  %v2538_v38 = vld [vmem:[%s2421_s9 + $0x130] sm:$0xff] }
  0x1f   : > { %3643 = vst [vmem:[#allocation16_spill] sm:$0xff] %v2460_v12  ;;  %v2541_v39 = vld [vmem:[%s2421_s9 + $0x138] sm:$0xff]  ;;  %v2544_v40 = vld [vmem:[%s2421_s9 + $0x140] sm:$0xff]  ;;  %v2547_v41 = vld [vmem:[%s2421_s9 + $0x148] sm:$0xff] }
  0x20   : > { %3644 = vst [vmem:[#allocation17_spill] sm:$0xff] %v2463_v13  ;;  %v2550_v42 = vld [vmem:[%s2421_s9 + $0x150] sm:$0xff]  ;;  %v2553_v43 = vld [vmem:[%s2421_s9 + $0x158] sm:$0xff]  ;;  %v2556_v44 = vld [vmem:[%s2421_s9 + $0x160] sm:$0xff] }
  0x21   : > { %3645 = vst [vmem:[#allocation18_spill] sm:$0xff] %v2466_v14  ;;  %v2560_v45 = vld [vmem:[%s2421_s9 + $0x168] sm:$0xff]  ;;  %v2563_v46 = vld [vmem:[%s2421_s9 + $0x170] sm:$0xff]  ;;  %v2566_v47 = vld [vmem:[%s2421_s9 + $0x178] sm:$0xff] }
  0x22   : > { %3646 = vst [vmem:[#allocation19_spill] sm:$0xff] %v2469_v15  ;;  %v2569_v48 = vld [vmem:[%s2421_s9 + $0x180] sm:$0xff]  ;;  %v2572_v49 = vld [vmem:[%s2421_s9 + $0x188] sm:$0xff]  ;;  %v2575_v50 = vld [vmem:[%s2421_s9 + $0x190] sm:$0xff] }
  0x23   : > { %3647 = vst [vmem:[#allocation20_spill] sm:$0xff] %v2472_v16  ;;  %v2578_v51 = vld [vmem:[%s2421_s9 + $0x198] sm:$0xff]  ;;  %v2581_v52 = vld [vmem:[%s2421_s9 + $0x1a0] sm:$0xff]  ;;  %v2584_v53 = vld [vmem:[%s2421_s9 + $0x1a8] sm:$0xff] }
  0x24   : > { %3648 = vst [vmem:[#allocation21_spill] sm:$0xff] %v2475_v17  ;;  %v2590_v54 = vld [vmem:[%s2421_s9 + $0x1b0] sm:$0xff]  ;;  %v2593_v55 = vld [vmem:[%s2421_s9 + $0x1b8] sm:$0xff]  ;;  %v2596_v56 = vld [vmem:[%s2421_s9 + $0x1c0] sm:$0xff]  ;;  %458 = sbr.rel (%p2151_p5) target bundleno = 237 (0xed), region = 44 }
  0x25   : > { %3649 = vst [vmem:[#allocation22_spill] sm:$0xff] %v2478_v18  ;;  %v2599_v57 = vld [vmem:[%s2421_s9 + $0x1c8] sm:$0xff]  ;;  %v2602_v58 = vld [vmem:[%s2421_s9 + $0x1d0] sm:$0xff]  ;;  %v2605_v59 = vld [vmem:[%s2421_s9 + $0x1d8] sm:$0xff] }
  0x26   : > { %3650 = vst [vmem:[#allocation23_spill] sm:$0xff] %v2481_v19  ;;  %v2608_v60 = vld [vmem:[%s2421_s9 + $0x1e0] sm:$0xff]  ;;  %v2611_v61 = vld [vmem:[%s2421_s9 + $0x1e8] sm:$0xff]  ;;  %v2614_v62 = vld [vmem:[%s2421_s9 + $0x1f0] sm:$0xff] }
  0x27   : > { %3651 = vst [vmem:[#allocation24_spill] sm:$0xff] %v2490_v22  ;;  %v2617_v63 = vld [vmem:[%s2421_s9 + $0x1f8] sm:$0xff]  ;;  %v2619_v1 = vld [vmem:[%s376_s13] sm:$0xf] }
  0x28   : > { %3652 = vst [vmem:[#allocation25_spill] sm:$0xff] %v2493_v23 }
  0x29   : > { %v473_v0 = vld [vmem:[%s3580_s1 + $0x30] sm:$0xff]  ;;  %v474_v2 = vld [vmem:[%s3580_s1 + $0x38] sm:$0xff]  ;;  %v459_v4 = vld [vmem:[%s3579_s0] sm:$0xff]  ;;  %vm484_vm0 = vcmask 130048  }
  0x2a   : > { %v469_v3 = vld [vmem:[%s3580_s1 + $0x10] sm:$0xff]  ;;  %605 = vmatpush.msra.mxu2 %v473_v0  ;;  %646 = vmatpush.msra.mxu3 %v474_v2  ;;  %v470_v5 = vld [vmem:[%s3580_s1 + $0x18] sm:$0xff]  ;;  %v471_v6 = vld [vmem:[%s3580_s1 + $0x20] sm:$0xff] }
  0x2b   : > { %523 = vmatpush.msra.mxu0 %v471_v6  ;;  %v472_v7 = vld [vmem:[%s3580_s1 + $0x28] sm:$0xff]  ;;  %v467_v0 = vld [vmem:[%s3580_s1] sm:$0xff] }
  0x2c   : > { %606 = vmatpush.msra.mxu2 %v469_v3  ;;  %647 = vmatpush.msra.mxu3 %v470_v5  ;;  %v468_v2 = vld [vmem:[%s3580_s1 + $0x8] sm:$0xff]  ;;  %v461_v5 = vld [vmem:[%s3579_s0 + $0x10] sm:$0xff]  ;;  %v463_v6 = vld [vmem:[%s3579_s0 + $0x20] sm:$0xff] }
  0x2d   : > { %2168 = vmatmul.msk.f32.vlgmr.msra.gmra.mxu2 %vm484_vm0, %v459_v4  ;;  %2176 = vmatmul.msk.f32.vlgmr.msra.gmra.mxu3 %vm484_vm0, %v459_v4  ;;  %v460_v3 = vld [vmem:[%s3579_s0 + $0x8] sm:$0xff] }
  0x2e   : > { %564 = vmatpush.msra.mxu1 %v472_v7  ;;  %524 = vmatpush.msra.mxu0 %v467_v0  ;;  %v464_v7 = vld [vmem:[%s3579_s0 + $0x28] sm:$0xff]  ;;  %v465_v0 = vld [vmem:[%s3579_s0 + $0x30] sm:$0xff] }
  0x2f   : > { %2152 = vmatmul.msk.f32.vlgmr.msra.gmra.mxu0 %vm484_vm0, %v459_v4 }
  0x30   : > { %565 = vmatpush.msra.mxu1 %v468_v2  ;;  %v466_v2 = vld [vmem:[%s3579_s0 + $0x38] sm:$0xff] }
  0x31   : > { %2160 = vmatmul.msk.f32.vlgmr.msra.gmra.mxu1 %vm484_vm0, %v459_v4  ;;  %v462_v4 = vld [vmem:[%s3579_s0 + $0x18] sm:$0xff] }
  0x35   : > { %2169 = vmatmul.msk.f32.gmra.mxu2 %vm484_vm0, %v460_v3  ;;  %2177 = vmatmul.msk.f32.gmra.mxu3 %vm484_vm0, %v460_v3 }
  0x37   : > { %2153 = vmatmul.msk.f32.gmra.mxu0 %vm484_vm0, %v460_v3 }
  0x39   : > { %2161 = vmatmul.msk.f32.gmra.mxu1 %vm484_vm0, %v460_v3  ;;  %v2703_v3 = vperm.slane %v2619_v1, 0 }
  0x3d   : > { %2170 = vmatmul.msk.f32.gmra.mxu2 %vm484_vm0, %v461_v5  ;;  %2178 = vmatmul.msk.f32.gmra.mxu3 %vm484_vm0, %v461_v5 }
  0x3f   : > { %2154 = vmatmul.msk.f32.gmra.mxu0 %vm484_vm0, %v461_v5 }
  0x41   : > { %2162 = vmatmul.msk.f32.gmra.mxu1 %vm484_vm0, %v461_v5  ;;  %v2706_v5 = vperm.slane %v2619_v1, 1 }
  0x45   : > { %2171 = vmatmul.msk.f32.gmra.mxu2 %vm484_vm0, %v462_v4  ;;  %2179 = vmatmul.msk.f32.gmra.mxu3 %vm484_vm0, %v462_v4 }
  0x47   : > { %2155 = vmatmul.msk.f32.gmra.mxu0 %vm484_vm0, %v462_v4 }
  0x49   : > { %2163 = vmatmul.msk.f32.gmra.mxu1 %vm484_vm0, %v462_v4 }
  0x4d   : > { %2172 = vmatmul.msk.f32.gmra.mxu2 %vm484_vm0, %v463_v6  ;;  %2180 = vmatmul.msk.f32.gmra.mxu3 %vm484_vm0, %v463_v6 }
  0x4f   : > { %2156 = vmatmul.msk.f32.gmra.mxu0 %vm484_vm0, %v463_v6 }
  0x51   : > { %2164 = vmatmul.msk.f32.gmra.mxu1 %vm484_vm0, %v463_v6 }
  0x55   : > { %2173 = vmatmul.msk.f32.gmra.mxu2 %vm484_vm0, %v464_v7  ;;  %2181 = vmatmul.msk.f32.gmra.mxu3 %vm484_vm0, %v464_v7 }
  0x57   : > { %2157 = vmatmul.msk.f32.gmra.mxu0 %vm484_vm0, %v464_v7 }
  0x59   : > { %2165 = vmatmul.msk.f32.gmra.mxu1 %vm484_vm0, %v464_v7  ;;  %v2710_v7 = vperm.slane %v2619_v1, 2 }
  0x5d   : > { %2174 = vmatmul.msk.f32.gmra.mxu2 %vm484_vm0, %v465_v0  ;;  %2182 = vmatmul.msk.f32.gmra.mxu3 %vm484_vm0, %v465_v0 }
  0x5f   : > { %2158 = vmatmul.msk.f32.gmra.mxu0 %vm484_vm0, %v465_v0 }
  0x61   : > { %2166 = vmatmul.msk.f32.gmra.mxu1 %vm484_vm0, %v465_v0  ;;  %v2713_v0 = vperm.slane %v2619_v1, 3 }
  0x65   : > { %2175 = vmatmul.msk.f32.gmra.mxu2 %vm484_vm0, %v466_v2  ;;  %2183 = vmatmul.msk.f32.gmra.mxu3 %vm484_vm0, %v466_v2 }
  0x67   : > { %2159 = vmatmul.msk.f32.gmra.mxu0 %vm484_vm0, %v466_v2 }
  0x69   : > { %2167 = vmatmul.msk.f32.gmra.mxu1 %vm484_vm0, %v466_v2 }
  0xac   : > { %v526_v4 = vpop.f32.mrf.mxu0 }
  0xad   : > { %v527_v6 = vadd.f32 %v526_v4, %v2703_v3 }
  0xae   : > { %v567_v9 = vpop.f32.mrf.mxu1 }
  0xaf   : > { %673 = vst [vmem:[#allocation2 + $0xb0] sm:$0xff] %v527_v6  ;;  %v568_v8 = vadd.f32 %v567_v9, %v2706_v5 }
  0xb0   : > { %v608_v2 = vpop.f32.mrf.mxu2  ;;  %v649_v10 = vpop.f32.mrf.mxu3 }
  0xb1   : > { %674 = vst [vmem:[#allocation2] sm:$0xff] %v568_v8  ;;  %v609_v11 = vadd.f32 %v608_v2, %v2710_v7  ;;  %v650_v13 = vadd.f32 %v649_v10, %v2713_v0 }
  0xb3   : > { %675 = vst [vmem:[#allocation2 + $0xd8] sm:$0xff] %v609_v11 }
  0xb4   : > { %676 = vst [vmem:[#allocation2 + $0x18] sm:$0xff] %v650_v13  ;;  %v529_v4 = vpop.f32.mrf.mxu0 }
  0xb5   : > { %v530_v12 = vadd.f32 %v529_v4, %v2703_v3 }
  0xb6   : > { %v570_v14 = vpop.f32.mrf.mxu1 }
  0xb7   : > { %677 = vst [vmem:[#allocation2 + $0x50] sm:$0xff] %v530_v12  ;;  %v571_v15 = vadd.f32 %v570_v14, %v2706_v5 }
  0xb8   : > { %v611_v17 = vpop.f32.mrf.mxu2  ;;  %v652_v6 = vpop.f32.mrf.mxu3 }
  0xb9   : > { %678 = vst [vmem:[#allocation2 + $0x68] sm:$0xff] %v571_v15  ;;  %v612_v9 = vadd.f32 %v611_v17, %v2710_v7  ;;  %v653_v8 = vadd.f32 %v652_v6, %v2713_v0 }
  0xbb   : > { %679 = vst [vmem:[#allocation2 + $0x30] sm:$0xff] %v612_v9 }
  0xbc   : > { %680 = vst [vmem:[#allocation2 + $0x48] sm:$0xff] %v653_v8  ;;  %v532_v2 = vpop.f32.mrf.mxu0 }
  0xbd   : > { %v533_v10 = vadd.f32 %v532_v2, %v2703_v3 }
  0xbe   : > { %v573_v11 = vpop.f32.mrf.mxu1 }
  0xbf   : > { %681 = vst [vmem:[#allocation2 + $0x80] sm:$0xff] %v533_v10  ;;  %v574_v13 = vadd.f32 %v573_v11, %v2706_v5 }
  0xc0   : > { %v614_v4 = vpop.f32.mrf.mxu2  ;;  %v655_v12 = vpop.f32.mrf.mxu3 }
  0xc1   : > { %682 = vst [vmem:[#allocation2 + $0x88] sm:$0xff] %v574_v13  ;;  %v615_v14 = vadd.f32 %v614_v4, %v2710_v7  ;;  %v656_v15 = vadd.f32 %v655_v12, %v2713_v0 }
  0xc3   : > { %683 = vst [vmem:[#allocation2 + $0xe8] sm:$0xff] %v615_v14 }
  0xc4   : > { %684 = vst [vmem:[#allocation2 + $0xb8] sm:$0xff] %v656_v15  ;;  %v535_v17 = vpop.f32.mrf.mxu0 }
  0xc5   : > { %v536_v6 = vadd.f32 %v535_v17, %v2703_v3 }
  0xc6   : > { %v576_v9 = vpop.f32.mrf.mxu1 }
  0xc7   : > { %685 = vst [vmem:[#allocation2 + $0x60] sm:$0xff] %v536_v6  ;;  %v577_v8 = vadd.f32 %v576_v9, %v2706_v5 }
  0xc8   : > { %v617_v2 = vpop.f32.mrf.mxu2  ;;  %v658_v10 = vpop.f32.mrf.mxu3 }
  0xc9   : > { %686 = vst [vmem:[#allocation2 + $0xf0] sm:$0xff] %v577_v8  ;;  %v618_v11 = vadd.f32 %v617_v2, %v2710_v7  ;;  %v659_v13 = vadd.f32 %v658_v10, %v2713_v0 }
  0xcb   : > { %687 = vst [vmem:[#allocation2 + $0x8] sm:$0xff] %v618_v11 }
  0xcc   : > { %688 = vst [vmem:[#allocation2 + $0x78] sm:$0xff] %v659_v13  ;;  %v538_v4 = vpop.f32.mrf.mxu0 }
  0xcd   : > { %v539_v12 = vadd.f32 %v538_v4, %v2703_v3 }
  0xce   : > { %v579_v14 = vpop.f32.mrf.mxu1 }
  0xcf   : > { %689 = vst [vmem:[#allocation2 + $0x38] sm:$0xff] %v539_v12  ;;  %v580_v15 = vadd.f32 %v579_v14, %v2706_v5 }
  0xd0   : > { %v620_v17 = vpop.f32.mrf.mxu2  ;;  %v661_v6 = vpop.f32.mrf.mxu3 }
  0xd1   : > { %690 = vst [vmem:[#allocation2 + $0x58] sm:$0xff] %v580_v15  ;;  %v621_v9 = vadd.f32 %v620_v17, %v2710_v7  ;;  %v662_v8 = vadd.f32 %v661_v6, %v2713_v0 }
  0xd3   : > { %691 = vst [vmem:[#allocation2 + $0x40] sm:$0xff] %v621_v9 }
  0xd4   : > { %692 = vst [vmem:[#allocation2 + $0xc8] sm:$0xff] %v662_v8  ;;  %v541_v2 = vpop.f32.mrf.mxu0 }
  0xd5   : > { %v542_v10 = vadd.f32 %v541_v2, %v2703_v3 }
  0xd6   : > { %v582_v11 = vpop.f32.mrf.mxu1 }
  0xd7   : > { %693 = vst [vmem:[#allocation2 + $0xe0] sm:$0xff] %v542_v10  ;;  %v583_v13 = vadd.f32 %v582_v11, %v2706_v5 }
  0xd8   : > { %v623_v4 = vpop.f32.mrf.mxu2  ;;  %v664_v12 = vpop.f32.mrf.mxu3 }
  0xd9   : > { %694 = vst [vmem:[#allocation2 + $0x90] sm:$0xff] %v583_v13  ;;  %v624_v14 = vadd.f32 %v623_v4, %v2710_v7  ;;  %v665_v15 = vadd.f32 %v664_v12, %v2713_v0 }
  0xdb   : > { %695 = vst [vmem:[#allocation2 + $0x70] sm:$0xff] %v624_v14 }
  0xdc   : > { %696 = vst [vmem:[#allocation2 + $0xc0] sm:$0xff] %v665_v15  ;;  %v544_v17 = vpop.f32.mrf.mxu0 }
  0xdd   : > { %v545_v6 = vadd.f32 %v544_v17, %v2703_v3 }
  0xde   : > { %v585_v9 = vpop.f32.mrf.mxu1 }
  0xdf   : > { %697 = vst [vmem:[#allocation2 + $0xa8] sm:$0xff] %v545_v6  ;;  %v586_v8 = vadd.f32 %v585_v9, %v2706_v5 }
  0xe0   : > { %v626_v2 = vpop.f32.mrf.mxu2  ;;  %v667_v10 = vpop.f32.mrf.mxu3 }
  0xe1   : > { %698 = vst [vmem:[#allocation2 + $0xd0] sm:$0xff] %v586_v8  ;;  %v627_v11 = vadd.f32 %v626_v2, %v2710_v7  ;;  %v668_v13 = vadd.f32 %v667_v10, %v2713_v0 }
  0xe3   : > { %699 = vst [vmem:[#allocation2 + $0x10] sm:$0xff] %v627_v11 }
  0xe4   : > { %700 = vst [vmem:[#allocation2 + $0x28] sm:$0xff] %v668_v13  ;;  %v547_v4 = vpop.f32.mrf.mxu0 }
  0xe5   : > { %v548_v12 = vadd.f32 %v547_v4, %v2703_v3 }
  0xe6   : > { %v588_v14 = vpop.f32.mrf.mxu1 }
  0xe7   : > { %701 = vst [vmem:[#allocation2 + $0xa0] sm:$0xff] %v548_v12  ;;  %v589_v15 = vadd.f32 %v588_v14, %v2706_v5 }
  0xe8   : > { %v629_v17 = vpop.f32.mrf.mxu2  ;;  %v670_v6 = vpop.f32.mrf.mxu3 }
  0xe9   : > { %702 = vst [vmem:[#allocation2 + $0xf8] sm:$0xff] %v589_v15  ;;  %v630_v9 = vadd.f32 %v629_v17, %v2710_v7  ;;  %v671_v8 = vadd.f32 %v670_v6, %v2713_v0 }
  0xeb   : > { %703 = vst [vmem:[#allocation2 + $0x20] sm:$0xff] %v630_v9 }
  0xec   : > { %704 = vst [vmem:[#allocation2 + $0x98] sm:$0xff] %v671_v8 }
  0xed PF: > { %p2184_p6 = scmp.le.s32.totalorder %s2342_s24, 0 }
  0xef   : > { %708 = sbr.rel (%p2184_p6) target bundleno = 468 (0x1d4), region = 48 }
  0xf4   : > { %v779_v3 = vld [vmem:[%s3581_s2 + $0x1f0] sm:$0xff]  ;;  %v780_v5 = vld [vmem:[%s3581_s2 + $0x1f8] sm:$0xff]  ;;  %v777_v11 = vld [vmem:[%s3581_s2 + $0x1e0] sm:$0xff] }
  0xf5   : > { %v775_v7 = vld [vmem:[%s3581_s2 + $0x1d0] sm:$0xff]  ;;  %872 = vmatpush.msra.mxu2 %v779_v3  ;;  %913 = vmatpush.msra.mxu3 %v780_v5  ;;  %v776_v0 = vld [vmem:[%s3581_s2 + $0x1d8] sm:$0xff]  ;;  %v778_v13 = vld [vmem:[%s3581_s2 + $0x1e8] sm:$0xff] }
  0xf6   : > { %v771_v2 = vld [vmem:[%s3581_s2 + $0x1b0] sm:$0xff]  ;;  %v772_v10 = vld [vmem:[%s3581_s2 + $0x1b8] sm:$0xff]  ;;  %v773_v4 = vld [vmem:[%s3581_s2 + $0x1c0] sm:$0xff]  ;;  %790 = vmatpush.msra.mxu0 %v777_v11  ;;  %831 = vmatpush.msra.mxu1 %v778_v13 }
  0xf7   : > { %873 = vmatpush.msra.mxu2 %v775_v7  ;;  %914 = vmatpush.msra.mxu3 %v776_v0  ;;  %v774_v12 = vld [vmem:[%s3581_s2 + $0x1c8] sm:$0xff]  ;;  %v767_v14 = vld [vmem:[%s3581_s2 + $0x190] sm:$0xff]  ;;  %v768_v15 = vld [vmem:[%s3581_s2 + $0x198] sm:$0xff] }
  0xf8   : > { %v769_v17 = vld [vmem:[%s3581_s2 + $0x1a0] sm:$0xff]  ;;  %v770_v6 = vld [vmem:[%s3581_s2 + $0x1a8] sm:$0xff]  ;;  %791 = vmatpush.msra.mxu0 %v773_v4  ;;  %832 = vmatpush.msra.mxu1 %v774_v12  ;;  %v763_v9 = vld [vmem:[%s3581_s2 + $0x170] sm:$0xff] }
  0xf9   : > { %874 = vmatpush.msra.mxu2 %v771_v2  ;;  %915 = vmatpush.msra.mxu3 %v772_v10  ;;  %v764_v8 = vld [vmem:[%s3581_s2 + $0x178] sm:$0xff]  ;;  %v765_v3 = vld [vmem:[%s3581_s2 + $0x180] sm:$0xff]  ;;  %v766_v5 = vld [vmem:[%s3581_s2 + $0x188] sm:$0xff] }
  0xfa   : > { %792 = vmatpush.msra.mxu0 %v769_v17  ;;  %833 = vmatpush.msra.mxu1 %v770_v6  ;;  %v759_v7 = vld [vmem:[%s3581_s2 + $0x150] sm:$0xff]  ;;  %v760_v0 = vld [vmem:[%s3581_s2 + $0x158] sm:$0xff]  ;;  %v761_v2 = vld [vmem:[%s3581_s2 + $0x160] sm:$0xff] }
  0xfb   : > { %875 = vmatpush.msra.mxu2 %v767_v14  ;;  %916 = vmatpush.msra.mxu3 %v768_v15  ;;  %v762_v10 = vld [vmem:[%s3581_s2 + $0x168] sm:$0xff]  ;;  %v755_v11 = vld [vmem:[%s3581_s2 + $0x130] sm:$0xff]  ;;  %v756_v13 = vld [vmem:[%s3581_s2 + $0x138] sm:$0xff] }
  0xfc   : > { %793 = vmatpush.msra.mxu0 %v765_v3  ;;  %834 = vmatpush.msra.mxu1 %v766_v5  ;;  %v757_v4 = vld [vmem:[%s3581_s2 + $0x140] sm:$0xff]  ;;  %v758_v12 = vld [vmem:[%s3581_s2 + $0x148] sm:$0xff]  ;;  %v751_v14 = vld [vmem:[%s3581_s2 + $0x110] sm:$0xff] }
  0xfd   : > { %876 = vmatpush.msra.mxu2 %v763_v9  ;;  %917 = vmatpush.msra.mxu3 %v764_v8  ;;  %v752_v15 = vld [vmem:[%s3581_s2 + $0x118] sm:$0xff]  ;;  %v753_v17 = vld [vmem:[%s3581_s2 + $0x120] sm:$0xff]  ;;  %v754_v6 = vld [vmem:[%s3581_s2 + $0x128] sm:$0xff] }
  0xfe   : > { %794 = vmatpush.msra.mxu0 %v761_v2  ;;  %835 = vmatpush.msra.mxu1 %v762_v10  ;;  %v747_v9 = vld [vmem:[%s3581_s2 + $0xf0] sm:$0xff]  ;;  %v748_v8 = vld [vmem:[%s3581_s2 + $0xf8] sm:$0xff]  ;;  %v749_v3 = vld [vmem:[%s3581_s2 + $0x100] sm:$0xff] }
  0xff   : > { %877 = vmatpush.msra.mxu2 %v759_v7  ;;  %918 = vmatpush.msra.mxu3 %v760_v0  ;;  %v750_v5 = vld [vmem:[%s3581_s2 + $0x108] sm:$0xff]  ;;  %v743_v7 = vld [vmem:[%s3581_s2 + $0xd0] sm:$0xff]  ;;  %v744_v0 = vld [vmem:[%s3581_s2 + $0xd8] sm:$0xff] }
 0x100   : > { %795 = vmatpush.msra.mxu0 %v757_v4  ;;  %836 = vmatpush.msra.mxu1 %v758_v12  ;;  %v745_v2 = vld [vmem:[%s3581_s2 + $0xe0] sm:$0xff]  ;;  %v746_v10 = vld [vmem:[%s3581_s2 + $0xe8] sm:$0xff] }
 0x101   : > { %878 = vmatpush.msra.mxu2 %v755_v11  ;;  %919 = vmatpush.msra.mxu3 %v756_v13  ;;  %v739_v11 = vld [vmem:[%s3581_s2 + $0xb0] sm:$0xff]  ;;  %v740_v13 = vld [vmem:[%s3581_s2 + $0xb8] sm:$0xff]  ;;  %v741_v4 = vld [vmem:[%s3581_s2 + $0xc0] sm:$0xff] }
 0x102   : > { %796 = vmatpush.msra.mxu0 %v753_v17  ;;  %837 = vmatpush.msra.mxu1 %v754_v6  ;;  %v742_v12 = vld [vmem:[%s3581_s2 + $0xc8] sm:$0xff]  ;;  %v737_v17 = vld [vmem:[%s3581_s2 + $0xa0] sm:$0xff] }
 0x103   : > { %879 = vmatpush.msra.mxu2 %v751_v14  ;;  %920 = vmatpush.msra.mxu3 %v752_v15  ;;  %v735_v14 = vld [vmem:[%s3581_s2 + $0x90] sm:$0xff]  ;;  %v736_v15 = vld [vmem:[%s3581_s2 + $0x98] sm:$0xff]  ;;  %v738_v6 = vld [vmem:[%s3581_s2 + $0xa8] sm:$0xff] }
 0x104   : > { %797 = vmatpush.msra.mxu0 %v749_v3  ;;  %838 = vmatpush.msra.mxu1 %v750_v5  ;;  %v733_v3 = vld [vmem:[%s3581_s2 + $0x80] sm:$0xff]  ;;  %v734_v5 = vld [vmem:[%s3581_s2 + $0x88] sm:$0xff] }
 0x105   : > { %880 = vmatpush.msra.mxu2 %v747_v9  ;;  %921 = vmatpush.msra.mxu3 %v748_v8  ;;  %v731_v9 = vld [vmem:[%s3581_s2 + $0x70] sm:$0xff]  ;;  %v732_v8 = vld [vmem:[%s3581_s2 + $0x78] sm:$0xff] }
 0x106   : > { %798 = vmatpush.msra.mxu0 %v745_v2  ;;  %839 = vmatpush.msra.mxu1 %v746_v10  ;;  %v729_v2 = vld [vmem:[%s3581_s2 + $0x60] sm:$0xff]  ;;  %v730_v10 = vld [vmem:[%s3581_s2 + $0x68] sm:$0xff] }
 0x107   : > { %881 = vmatpush.msra.mxu2 %v743_v7  ;;  %922 = vmatpush.msra.mxu3 %v744_v0  ;;  %v727_v7 = vld [vmem:[%s3581_s2 + $0x50] sm:$0xff]  ;;  %v728_v0 = vld [vmem:[%s3581_s2 + $0x58] sm:$0xff] }
 0x108   : > { %799 = vmatpush.msra.mxu0 %v741_v4  ;;  %840 = vmatpush.msra.mxu1 %v742_v12  ;;  %v725_v4 = vld [vmem:[%s3581_s2 + $0x40] sm:$0xff]  ;;  %v726_v12 = vld [vmem:[%s3581_s2 + $0x48] sm:$0xff] }
 0x109   : > { %882 = vmatpush.msra.mxu2 %v739_v11  ;;  %923 = vmatpush.msra.mxu3 %v740_v13  ;;  %v723_v11 = vld [vmem:[%s3581_s2 + $0x30] sm:$0xff]  ;;  %v724_v13 = vld [vmem:[%s3581_s2 + $0x38] sm:$0xff] }
 0x10a   : > { %800 = vmatpush.msra.mxu0 %v737_v17  ;;  %841 = vmatpush.msra.mxu1 %v738_v6  ;;  %v709_v17 = vld [vmem:[%s3584_s5] sm:$0xff] }
 0x10b   : > { %883 = vmatpush.msra.mxu2 %v735_v14  ;;  %924 = vmatpush.msra.mxu3 %v736_v15  ;;  %v719_v14 = vld [vmem:[%s3581_s2 + $0x10] sm:$0xff]  ;;  %v720_v15 = vld [vmem:[%s3581_s2 + $0x18] sm:$0xff]  ;;  %v721_v6 = vld [vmem:[%s3581_s2 + $0x20] sm:$0xff] }
 0x10c   : > { %801 = vmatpush.msra.mxu0 %v733_v3  ;;  %842 = vmatpush.msra.mxu1 %v734_v5  ;;  %v718_v3 = vld [vmem:[%s3581_s2 + $0x8] sm:$0xff] }
 0x10d   : > { %884 = vmatpush.msra.mxu2 %v731_v9  ;;  %925 = vmatpush.msra.mxu3 %v732_v8  ;;  %v722_v9 = vld [vmem:[%s3581_s2 + $0x28] sm:$0xff]  ;;  %v717_v8 = vld [vmem:[%s3581_s2] sm:$0xff] }
 0x10e   : > { %802 = vmatpush.msra.mxu0 %v729_v2  ;;  %843 = vmatpush.msra.mxu1 %v730_v10  ;;  %v710_v5 = vld [vmem:[%s3584_s5 + $0x8] sm:$0xff]  ;;  %v713_v2 = vld [vmem:[%s3584_s5 + $0x20] sm:$0xff] }
 0x10f   : > { %885 = vmatpush.msra.mxu2 %v727_v7  ;;  %926 = vmatpush.msra.mxu3 %v728_v0  ;;  %v711_v7 = vld [vmem:[%s3584_s5 + $0x10] sm:$0xff]  ;;  %v712_v0 = vld [vmem:[%s3584_s5 + $0x18] sm:$0xff]  ;;  %v714_v10 = vld [vmem:[%s3584_s5 + $0x28] sm:$0xff] }
 0x110   : > { %803 = vmatpush.msra.mxu0 %v725_v4  ;;  %844 = vmatpush.msra.mxu1 %v726_v12  ;;  %v2964_v4 = vperm.slane %v2619_v1, 0  ;;  %v2967_v12 = vperm.slane %v2619_v1, 1 }
 0x111   : > { %886 = vmatpush.msra.mxu2 %v723_v11  ;;  %927 = vmatpush.msra.mxu3 %v724_v13  ;;  %v715_v11 = vld [vmem:[%s3584_s5 + $0x30] sm:$0xff]  ;;  %v716_v13 = vld [vmem:[%s3584_s5 + $0x38] sm:$0xff] }
 0x112   : > { %804 = vmatpush.msra.mxu0 %v721_v6  ;;  %845 = vmatpush.msra.mxu1 %v722_v9 }
 0x113   : > { %887 = vmatpush.msra.mxu2 %v719_v14  ;;  %928 = vmatpush.msra.mxu3 %v720_v15  ;;  %v2970_v14 = vperm.slane %v2619_v1, 2  ;;  %v2973_v15 = vperm.slane %v2619_v1, 3 }
 0x114   : > { %888 = vmatmul.f32.vlgmr.msra.gmra.mxu2 %v709_v17  ;;  %929 = vmatmul.f32.vlgmr.msra.gmra.mxu3 %v709_v17 }
 0x115   : > { %805 = vmatpush.msra.mxu0 %v717_v8  ;;  %846 = vmatpush.msra.mxu1 %v718_v3 }
 0x116   : > { %806 = vmatmul.f32.vlgmr.msra.gmra.mxu0 %v709_v17  ;;  %847 = vmatmul.f32.vlgmr.msra.gmra.mxu1 %v709_v17 }
 0x11c   : > { %891 = vmatmul.f32.gmra.mxu2 %v710_v5  ;;  %932 = vmatmul.f32.gmra.mxu3 %v710_v5 }
 0x11e   : > { %809 = vmatmul.f32.gmra.mxu0 %v710_v5  ;;  %850 = vmatmul.f32.gmra.mxu1 %v710_v5 }
 0x124   : > { %894 = vmatmul.f32.gmra.mxu2 %v711_v7  ;;  %935 = vmatmul.f32.gmra.mxu3 %v711_v7 }
 0x126   : > { %812 = vmatmul.f32.gmra.mxu0 %v711_v7  ;;  %853 = vmatmul.f32.gmra.mxu1 %v711_v7 }
 0x12c   : > { %897 = vmatmul.f32.gmra.mxu2 %v712_v0  ;;  %938 = vmatmul.f32.gmra.mxu3 %v712_v0 }
 0x12e   : > { %815 = vmatmul.f32.gmra.mxu0 %v712_v0  ;;  %856 = vmatmul.f32.gmra.mxu1 %v712_v0 }
 0x134   : > { %900 = vmatmul.f32.gmra.mxu2 %v713_v2  ;;  %941 = vmatmul.f32.gmra.mxu3 %v713_v2 }
 0x136   : > { %818 = vmatmul.f32.gmra.mxu0 %v713_v2  ;;  %859 = vmatmul.f32.gmra.mxu1 %v713_v2 }
 0x13c   : > { %903 = vmatmul.f32.gmra.mxu2 %v714_v10  ;;  %944 = vmatmul.f32.gmra.mxu3 %v714_v10 }
 0x13e   : > { %821 = vmatmul.f32.gmra.mxu0 %v714_v10  ;;  %862 = vmatmul.f32.gmra.mxu1 %v714_v10 }
 0x144   : > { %906 = vmatmul.f32.gmra.mxu2 %v715_v11  ;;  %947 = vmatmul.f32.gmra.mxu3 %v715_v11 }
 0x146   : > { %824 = vmatmul.f32.gmra.mxu0 %v715_v11  ;;  %865 = vmatmul.f32.gmra.mxu1 %v715_v11 }
 0x14c   : > { %909 = vmatmul.f32.gmra.mxu2 %v716_v13  ;;  %950 = vmatmul.f32.gmra.mxu3 %v716_v13 }
 0x14e   : > { %827 = vmatmul.f32.gmra.mxu0 %v716_v13  ;;  %868 = vmatmul.f32.gmra.mxu1 %v716_v13 }
 0x193   : > { %v807_v17 = vpop.f32.mrf.mxu0  ;;  %v848_v6 = vpop.f32.mrf.mxu1 }
 0x194   : > { %v808_v9 = vadd.f32 %v807_v17, %v2964_v4  ;;  %v849_v8 = vadd.f32 %v848_v6, %v2967_v12 }
 0x196   : > { %954 = vst [vmem:[#allocation2 + $0xb0] sm:$0xff] %v808_v9 }
 0x197   : > { %v889_v3 = vpop.f32.mrf.mxu2  ;;  %v930_v5 = vpop.f32.mrf.mxu3  ;;  %955 = vst [vmem:[#allocation2] sm:$0xff] %v849_v8 }
 0x198   : > { %v890_v7 = vadd.f32 %v889_v3, %v2970_v14  ;;  %v931_v0 = vadd.f32 %v930_v5, %v2973_v15 }
 0x19a   : > { %956 = vst [vmem:[#allocation2 + $0xd8] sm:$0xff] %v890_v7 }
 0x19b   : > { %957 = vst [vmem:[#allocation2 + $0x18] sm:$0xff] %v931_v0  ;;  %v810_v2 = vpop.f32.mrf.mxu0  ;;  %v851_v10 = vpop.f32.mrf.mxu1 }
 0x19c   : > { %v811_v1 = vadd.f32 %v810_v2, %v2964_v4  ;;  %v852_v11 = vadd.f32 %v851_v10, %v2967_v12 }
 0x19e   : > { %958 = vst [vmem:[#allocation2 + $0x50] sm:$0xff] %v811_v1 }
 0x19f   : > { %v892_v13 = vpop.f32.mrf.mxu2  ;;  %v933_v17 = vpop.f32.mrf.mxu3  ;;  %959 = vst [vmem:[#allocation2 + $0x68] sm:$0xff] %v852_v11 }
 0x1a0   : > { %v893_v6 = vadd.f32 %v892_v13, %v2970_v14  ;;  %v934_v9 = vadd.f32 %v933_v17, %v2973_v15 }
 0x1a2   : > { %960 = vst [vmem:[#allocation2 + $0x30] sm:$0xff] %v893_v6 }
 0x1a3   : > { %961 = vst [vmem:[#allocation2 + $0x48] sm:$0xff] %v934_v9  ;;  %v813_v3 = vpop.f32.mrf.mxu0  ;;  %v854_v8 = vpop.f32.mrf.mxu1 }
 0x1a4   : > { %v814_v5 = vadd.f32 %v813_v3, %v2964_v4  ;;  %v855_v7 = vadd.f32 %v854_v8, %v2967_v12 }
 0x1a6   : > { %962 = vst [vmem:[#allocation2 + $0x80] sm:$0xff] %v814_v5 }
 0x1a7   : > { %v895_v0 = vpop.f32.mrf.mxu2  ;;  %v936_v2 = vpop.f32.mrf.mxu3  ;;  %963 = vst [vmem:[#allocation2 + $0x88] sm:$0xff] %v855_v7 }
 0x1a8   : > { %v896_v10 = vadd.f32 %v895_v0, %v2970_v14  ;;  %v937_v1 = vadd.f32 %v936_v2, %v2973_v15 }
 0x1aa   : > { %964 = vst [vmem:[#allocation2 + $0xe8] sm:$0xff] %v896_v10 }
 0x1ab   : > { %965 = vst [vmem:[#allocation2 + $0xb8] sm:$0xff] %v937_v1  ;;  %v816_v13 = vpop.f32.mrf.mxu0  ;;  %v857_v11 = vpop.f32.mrf.mxu1 }
 0x1ac   : > { %v817_v17 = vadd.f32 %v816_v13, %v2964_v4  ;;  %v858_v6 = vadd.f32 %v857_v11, %v2967_v12 }
 0x1ae   : > { %966 = vst [vmem:[#allocation2 + $0x60] sm:$0xff] %v817_v17 }
 0x1af   : > { %v898_v9 = vpop.f32.mrf.mxu2  ;;  %v939_v3 = vpop.f32.mrf.mxu3  ;;  %967 = vst [vmem:[#allocation2 + $0xf0] sm:$0xff] %v858_v6 }
 0x1b0   : > { %v899_v8 = vadd.f32 %v898_v9, %v2970_v14  ;;  %v940_v5 = vadd.f32 %v939_v3, %v2973_v15 }
 0x1b2   : > { %968 = vst [vmem:[#allocation2 + $0x8] sm:$0xff] %v899_v8 }
 0x1b3   : > { %969 = vst [vmem:[#allocation2 + $0x78] sm:$0xff] %v940_v5  ;;  %v819_v0 = vpop.f32.mrf.mxu0  ;;  %v860_v7 = vpop.f32.mrf.mxu1 }
 0x1b4   : > { %v820_v2 = vadd.f32 %v819_v0, %v2964_v4  ;;  %v861_v10 = vadd.f32 %v860_v7, %v2967_v12 }
 0x1b6   : > { %970 = vst [vmem:[#allocation2 + $0x38] sm:$0xff] %v820_v2 }
 0x1b7   : > { %v901_v1 = vpop.f32.mrf.mxu2  ;;  %v942_v13 = vpop.f32.mrf.mxu3  ;;  %971 = vst [vmem:[#allocation2 + $0x58] sm:$0xff] %v861_v10 }
 0x1b8   : > { %v902_v11 = vadd.f32 %v901_v1, %v2970_v14  ;;  %v943_v17 = vadd.f32 %v942_v13, %v2973_v15 }
 0x1ba   : > { %972 = vst [vmem:[#allocation2 + $0x40] sm:$0xff] %v902_v11 }
 0x1bb   : > { %973 = vst [vmem:[#allocation2 + $0xc8] sm:$0xff] %v943_v17  ;;  %v822_v9 = vpop.f32.mrf.mxu0  ;;  %v863_v6 = vpop.f32.mrf.mxu1 }
 0x1bc   : > { %v823_v3 = vadd.f32 %v822_v9, %v2964_v4  ;;  %v864_v8 = vadd.f32 %v863_v6, %v2967_v12 }
 0x1be   : > { %974 = vst [vmem:[#allocation2 + $0xe0] sm:$0xff] %v823_v3 }
 0x1bf   : > { %v904_v5 = vpop.f32.mrf.mxu2  ;;  %v945_v0 = vpop.f32.mrf.mxu3  ;;  %975 = vst [vmem:[#allocation2 + $0x90] sm:$0xff] %v864_v8 }
 0x1c0   : > { %v905_v7 = vadd.f32 %v904_v5, %v2970_v14  ;;  %v946_v2 = vadd.f32 %v945_v0, %v2973_v15 }
 0x1c2   : > { %976 = vst [vmem:[#allocation2 + $0x70] sm:$0xff] %v905_v7 }
 0x1c3   : > { %977 = vst [vmem:[#allocation2 + $0xc0] sm:$0xff] %v946_v2  ;;  %v825_v1 = vpop.f32.mrf.mxu0  ;;  %v866_v10 = vpop.f32.mrf.mxu1 }
 0x1c4   : > { %v826_v13 = vadd.f32 %v825_v1, %v2964_v4  ;;  %v867_v11 = vadd.f32 %v866_v10, %v2967_v12 }
 0x1c6   : > { %978 = vst [vmem:[#allocation2 + $0xa8] sm:$0xff] %v826_v13 }
 0x1c7   : > { %v907_v17 = vpop.f32.mrf.mxu2  ;;  %v948_v9 = vpop.f32.mrf.mxu3  ;;  %979 = vst [vmem:[#allocation2 + $0xd0] sm:$0xff] %v867_v11 }
 0x1c8   : > { %v908_v6 = vadd.f32 %v907_v17, %v2970_v14  ;;  %v949_v3 = vadd.f32 %v948_v9, %v2973_v15 }
 0x1ca   : > { %980 = vst [vmem:[#allocation2 + $0x10] sm:$0xff] %v908_v6 }
 0x1cb   : > { %981 = vst [vmem:[#allocation2 + $0x28] sm:$0xff] %v949_v3  ;;  %v828_v5 = vpop.f32.mrf.mxu0  ;;  %v869_v8 = vpop.f32.mrf.mxu1 }
 0x1cc   : > { %v829_v0 = vadd.f32 %v828_v5, %v2964_v4  ;;  %v870_v7 = vadd.f32 %v869_v8, %v2967_v12 }
 0x1ce   : > { %982 = vst [vmem:[#allocation2 + $0xa0] sm:$0xff] %v829_v0 }
 0x1cf   : > { %v910_v2 = vpop.f32.mrf.mxu2  ;;  %v951_v1 = vpop.f32.mrf.mxu3  ;;  %983 = vst [vmem:[#allocation2 + $0xf8] sm:$0xff] %v870_v7 }
 0x1d0   : > { %v911_v10 = vadd.f32 %v910_v2, %v2970_v14  ;;  %v952_v13 = vadd.f32 %v951_v1, %v2973_v15 }
 0x1d2   : > { %984 = vst [vmem:[#allocation2 + $0x20] sm:$0xff] %v911_v10 }
 0x1d3   : > { %985 = vst [vmem:[#allocation2 + $0x98] sm:$0xff] %v952_v13 }
 0x1d4 PF: > { %1053 = vmatpush.msra.mxu3 %v2617_v63  ;;  %1033 = vmatpush.msra.mxu2 %v2614_v62  ;;  %v3653_v4 = vld [vmem:[#allocation21_spill] sm:$0xff]  ;;  %v3654_v12 = vld [vmem:[#allocation19_spill] sm:$0xff]  ;;  %v3655_v14 = vld [vmem:[#allocation18_spill] sm:$0xff]  ;;  %v2352_v10 = vmov 0.0   ;;  %s2200_s14 = sshll.u32 %s2342_s24, 3 }
 0x1d5   : > { %993 = vmatpush.msra.mxu0 %v2608_v60  ;;  %1013 = vmatpush.msra.mxu1 %v2611_v61  ;;  %v3656_v15 = vld [vmem:[#allocation16_spill] sm:$0xff]  ;;  %v3657_v11 = vld [vmem:[#allocation17_spill] sm:$0xff]  ;;  %v3658_v17 = vld [vmem:[#allocation15_spill] sm:$0xff]  ;;  %s1964_s17 = scalar_lea.vmem %s3586_s7, %s2200_s14  ;;  %s1962_s19 = scalar_lea.vmem %s3585_s6, %s2200_s14 }
 0x1d6   : > { %1054 = vmatpush.msra.mxu3 %v2605_v59  ;;  %1034 = vmatpush.msra.mxu2 %v2602_v58  ;;  %v3659_v9 = vld [vmem:[#allocation14_spill] sm:$0xff]  ;;  %v3660_v6 = vld [vmem:[#allocation12_spill] sm:$0xff]  ;;  %v3661_v3 = vld [vmem:[#allocation13_spill] sm:$0xff] }
 0x1d7   : > { %994 = vmatpush.msra.mxu0 %v2596_v56  ;;  %1014 = vmatpush.msra.mxu1 %v2599_v57  ;;  %v3662_v5 = vld [vmem:[#allocation11_spill] sm:$0xff]  ;;  %v3663_v8 = vld [vmem:[#allocation10_spill] sm:$0xff]  ;;  %v3664_v0 = vld [vmem:[#allocation8_spill] sm:$0xff] }
 0x1d8   : > { %1055 = vmatpush.msra.mxu3 %v2593_v55  ;;  %1035 = vmatpush.msra.mxu2 %v2590_v54  ;;  %v3665_v7 = vld [vmem:[#allocation9_spill] sm:$0xff]  ;;  %v3666_v2 = vld [vmem:[#allocation7_spill] sm:$0xff]  ;;  %v3667_v1 = vld [vmem:[#allocation6_spill] sm:$0xff] }
 0x1d9   : > { %995 = vmatpush.msra.mxu0 %v2581_v52  ;;  %1015 = vmatpush.msra.mxu1 %v2584_v53  ;;  %v3668_v13 = vld [vmem:[#allocation4_spill] sm:$0xff] }
 0x1da   : > { %1056 = vmatpush.msra.mxu3 %v2578_v51  ;;  %1036 = vmatpush.msra.mxu2 %v2575_v50 }
 0x1db   : > { %996 = vmatpush.msra.mxu0 %v2569_v48  ;;  %1016 = vmatpush.msra.mxu1 %v2572_v49 }
 0x1dc   : > { %1057 = vmatpush.msra.mxu3 %v2566_v47  ;;  %1037 = vmatpush.msra.mxu2 %v2563_v46 }
 0x1dd   : > { %997 = vmatpush.msra.mxu0 %v2556_v44  ;;  %1017 = vmatpush.msra.mxu1 %v2560_v45 }
 0x1de   : > { %1058 = vmatpush.msra.mxu3 %v2553_v43  ;;  %1038 = vmatpush.msra.mxu2 %v2550_v42 }
 0x1df   : > { %998 = vmatpush.msra.mxu0 %v2544_v40  ;;  %1018 = vmatpush.msra.mxu1 %v2547_v41 }
 0x1e0   : > { %1059 = vmatpush.msra.mxu3 %v2541_v39  ;;  %1039 = vmatpush.msra.mxu2 %v2538_v38 }
 0x1e1   : > { %999 = vmatpush.msra.mxu0 %v2532_v36  ;;  %1019 = vmatpush.msra.mxu1 %v2535_v37 }
 0x1e2   : > { %1060 = vmatpush.msra.mxu3 %v2529_v35  ;;  %1040 = vmatpush.msra.mxu2 %v2526_v34 }
 0x1e3   : > { %1000 = vmatpush.msra.mxu0 %v2520_v32  ;;  %1020 = vmatpush.msra.mxu1 %v2523_v33 }
 0x1e4   : > { %1061 = vmatpush.msra.mxu3 %v2517_v31  ;;  %1041 = vmatpush.msra.mxu2 %v2514_v30 }
 0x1e5   : > { %1001 = vmatpush.msra.mxu0 %v2508_v28  ;;  %1021 = vmatpush.msra.mxu1 %v2511_v29 }
 0x1e6   : > { %1062 = vmatpush.msra.mxu3 %v2505_v27  ;;  %1042 = vmatpush.msra.mxu2 %v2502_v26 }
 0x1e7   : > { %1002 = vmatpush.msra.mxu0 %v2496_v24  ;;  %1022 = vmatpush.msra.mxu1 %v2499_v25 }
 0x1e8   : > { %1063 = vmatpush.msra.mxu3 %v2493_v23  ;;  %1043 = vmatpush.msra.mxu2 %v2490_v22 }
 0x1e9   : > { %1003 = vmatpush.msra.mxu0 %v2484_v20  ;;  %1023 = vmatpush.msra.mxu1 %v2487_v21 }
 0x1ea   : > { %1064 = vmatpush.msra.mxu3 %v2481_v19  ;;  %1044 = vmatpush.msra.mxu2 %v2478_v18 }
 0x1eb   : > { %1004 = vmatpush.msra.mxu0 %v2472_v16  ;;  %1024 = vmatpush.msra.mxu1 %v3653_v4 }
 0x1ec   : > { %1065 = vmatpush.msra.mxu3 %v3654_v12  ;;  %1045 = vmatpush.msra.mxu2 %v3655_v14 }
 0x1ed   : > { %1005 = vmatpush.msra.mxu0 %v3656_v15  ;;  %1025 = vmatpush.msra.mxu1 %v3657_v11 }
 0x1ee   : > { %1066 = vmatpush.msra.mxu3 %v3658_v17  ;;  %1046 = vmatpush.msra.mxu2 %v3659_v9  ;;  %v3669_v17 = vld [vmem:[#allocation5_spill] sm:$0xff] }
 0x1ef   : > { %1006 = vmatpush.msra.mxu0 %v3660_v6  ;;  %1026 = vmatpush.msra.mxu1 %v3661_v3 }
 0x1f0   : > { %1067 = vmatpush.msra.mxu3 %v3662_v5  ;;  %1047 = vmatpush.msra.mxu2 %v3663_v8 }
 0x1f1   : > { %1007 = vmatpush.msra.mxu0 %v3664_v0  ;;  %1027 = vmatpush.msra.mxu1 %v3665_v7 }
 0x1f2   : > { %1068 = vmatpush.msra.mxu3 %v3666_v2  ;;  %1048 = vmatpush.msra.mxu2 %v3667_v1 }
 0x1f3   : > { %1069 = vmatmul.f32.vlgmr.msra.gmra.mxu3 %v2352_v10  ;;  %1049 = vmatmul.f32.vlgmr.msra.gmra.mxu2 %v2352_v10 }
 0x1f4   : > { %1008 = vmatpush.msra.mxu0 %v3668_v13  ;;  %1028 = vmatpush.msra.mxu1 %v3669_v17 }
 0x1f5   : > { %1009 = vmatmul.f32.vlgmr.msra.gmra.mxu0 %v2352_v10  ;;  %1029 = vmatmul.f32.vlgmr.msra.gmra.mxu1 %v2352_v10  ;;  %v3670_v10 = vld [vmem:[#allocation15_spill] sm:$0xff] }
 0x1f6   : > { %1114 = vmatpush.msrb.mxu0 %v2608_v60  ;;  %1134 = vmatpush.msrb.mxu1 %v2611_v61 }
 0x1f7   : > { %1154 = vmatpush.msrb.mxu2 %v2614_v62  ;;  %1174 = vmatpush.msrb.mxu3 %v2617_v63 }
 0x1f8   : > { %1115 = vmatpush.msrb.mxu0 %v2596_v56  ;;  %1135 = vmatpush.msrb.mxu1 %v2599_v57 }
 0x1f9   : > { %1155 = vmatpush.msrb.mxu2 %v2602_v58  ;;  %1175 = vmatpush.msrb.mxu3 %v2605_v59 }
 0x1fa   : > { %1116 = vmatpush.msrb.mxu0 %v2581_v52  ;;  %1136 = vmatpush.msrb.mxu1 %v2584_v53 }
 0x1fb   : > { %1156 = vmatpush.msrb.mxu2 %v2590_v54  ;;  %1176 = vmatpush.msrb.mxu3 %v2593_v55 }
 0x1fc   : > { %1117 = vmatpush.msrb.mxu0 %v2569_v48  ;;  %1137 = vmatpush.msrb.mxu1 %v2572_v49 }
 0x1fd   : > { %1157 = vmatpush.msrb.mxu2 %v2575_v50  ;;  %1177 = vmatpush.msrb.mxu3 %v2578_v51 }
 0x1fe   : > { %1118 = vmatpush.msrb.mxu0 %v2556_v44  ;;  %1138 = vmatpush.msrb.mxu1 %v2560_v45 }
 0x1ff   : > { %1158 = vmatpush.msrb.mxu2 %v2563_v46  ;;  %1178 = vmatpush.msrb.mxu3 %v2566_v47 }
 0x200   : > { %1119 = vmatpush.msrb.mxu0 %v2544_v40  ;;  %1139 = vmatpush.msrb.mxu1 %v2547_v41 }
 0x201   : > { %1159 = vmatpush.msrb.mxu2 %v2550_v42  ;;  %1179 = vmatpush.msrb.mxu3 %v2553_v43 }
 0x202   : > { %1120 = vmatpush.msrb.mxu0 %v2532_v36  ;;  %1140 = vmatpush.msrb.mxu1 %v2535_v37 }
 0x203   : > { %1160 = vmatpush.msrb.mxu2 %v2538_v38  ;;  %1180 = vmatpush.msrb.mxu3 %v2541_v39 }
 0x204   : > { %1121 = vmatpush.msrb.mxu0 %v2520_v32  ;;  %1141 = vmatpush.msrb.mxu1 %v2523_v33 }
 0x205   : > { %1161 = vmatpush.msrb.mxu2 %v2526_v34  ;;  %1181 = vmatpush.msrb.mxu3 %v2529_v35 }
 0x206   : > { %1122 = vmatpush.msrb.mxu0 %v2508_v28  ;;  %1142 = vmatpush.msrb.mxu1 %v2511_v29 }
 0x207   : > { %1162 = vmatpush.msrb.mxu2 %v2514_v30  ;;  %1182 = vmatpush.msrb.mxu3 %v2517_v31 }
 0x208   : > { %1123 = vmatpush.msrb.mxu0 %v2496_v24  ;;  %1143 = vmatpush.msrb.mxu1 %v2499_v25 }
 0x209   : > { %1163 = vmatpush.msrb.mxu2 %v2502_v26  ;;  %1183 = vmatpush.msrb.mxu3 %v2505_v27 }
 0x20a   : > { %1124 = vmatpush.msrb.mxu0 %v2484_v20  ;;  %1144 = vmatpush.msrb.mxu1 %v2487_v21 }
 0x20b   : > { %1164 = vmatpush.msrb.mxu2 %v2490_v22  ;;  %1184 = vmatpush.msrb.mxu3 %v2493_v23 }
 0x20c   : > { %1125 = vmatpush.msrb.mxu0 %v2472_v16  ;;  %1145 = vmatpush.msrb.mxu1 %v3653_v4 }
 0x20d   : > { %1165 = vmatpush.msrb.mxu2 %v2478_v18  ;;  %1185 = vmatpush.msrb.mxu3 %v2481_v19 }
 0x20e   : > { %1126 = vmatpush.msrb.mxu0 %v3656_v15  ;;  %1146 = vmatpush.msrb.mxu1 %v3657_v11 }
 0x20f   : > { %1166 = vmatpush.msrb.mxu2 %v3655_v14  ;;  %1186 = vmatpush.msrb.mxu3 %v3654_v12 }
 0x210   : > { %1127 = vmatpush.msrb.mxu0 %v3660_v6  ;;  %1147 = vmatpush.msrb.mxu1 %v3661_v3 }
 0x211   : > { %1167 = vmatpush.msrb.mxu2 %v3659_v9  ;;  %1187 = vmatpush.msrb.mxu3 %v3670_v10 }
 0x212   : > { %1128 = vmatpush.msrb.mxu0 %v3664_v0  ;;  %1148 = vmatpush.msrb.mxu1 %v3665_v7 }
 0x213   : > { %1168 = vmatpush.msrb.mxu2 %v3663_v8  ;;  %1188 = vmatpush.msrb.mxu3 %v3662_v5 }
 0x214   : > { %1129 = vmatpush.msrb.mxu0 %v3668_v13  ;;  %1149 = vmatpush.msrb.mxu1 %v3669_v17 }
 0x215   : > { %1169 = vmatpush.msrb.mxu2 %v3667_v1  ;;  %1189 = vmatpush.msrb.mxu3 %v3666_v2 }
 0x216   : > { %1236 = vmatpush.msra.mxu0 %v2608_v60  ;;  %1256 = vmatpush.msra.mxu1 %v2611_v61 }
 0x217   : > { %1276 = vmatpush.msra.mxu2 %v2614_v62  ;;  %1296 = vmatpush.msra.mxu3 %v2617_v63 }
 0x218   : > { %1237 = vmatpush.msra.mxu0 %v2596_v56  ;;  %1257 = vmatpush.msra.mxu1 %v2599_v57 }
 0x219   : > { %1277 = vmatpush.msra.mxu2 %v2602_v58  ;;  %1297 = vmatpush.msra.mxu3 %v2605_v59 }
 0x21a   : > { %1238 = vmatpush.msra.mxu0 %v2581_v52  ;;  %1258 = vmatpush.msra.mxu1 %v2584_v53 }
 0x21b   : > { %1278 = vmatpush.msra.mxu2 %v2590_v54  ;;  %1298 = vmatpush.msra.mxu3 %v2593_v55 }
 0x21c   : > { %1239 = vmatpush.msra.mxu0 %v2569_v48  ;;  %1259 = vmatpush.msra.mxu1 %v2572_v49 }
 0x21d   : > { %1279 = vmatpush.msra.mxu2 %v2575_v50  ;;  %1299 = vmatpush.msra.mxu3 %v2578_v51 }
 0x21e   : > { %1240 = vmatpush.msra.mxu0 %v2556_v44  ;;  %1260 = vmatpush.msra.mxu1 %v2560_v45 }
 0x21f   : > { %1280 = vmatpush.msra.mxu2 %v2563_v46  ;;  %1300 = vmatpush.msra.mxu3 %v2566_v47 }
 0x220   : > { %1241 = vmatpush.msra.mxu0 %v2544_v40  ;;  %1261 = vmatpush.msra.mxu1 %v2547_v41 }
 0x221   : > { %1281 = vmatpush.msra.mxu2 %v2550_v42  ;;  %1301 = vmatpush.msra.mxu3 %v2553_v43 }
 0x222   : > { %1242 = vmatpush.msra.mxu0 %v2532_v36  ;;  %1262 = vmatpush.msra.mxu1 %v2535_v37 }
 0x223   : > { %1282 = vmatpush.msra.mxu2 %v2538_v38  ;;  %1302 = vmatpush.msra.mxu3 %v2541_v39 }
 0x224   : > { %1243 = vmatpush.msra.mxu0 %v2520_v32  ;;  %1263 = vmatpush.msra.mxu1 %v2523_v33 }
 0x225   : > { %1283 = vmatpush.msra.mxu2 %v2526_v34  ;;  %1303 = vmatpush.msra.mxu3 %v2529_v35 }
 0x226   : > { %1244 = vmatpush.msra.mxu0 %v2508_v28  ;;  %1264 = vmatpush.msra.mxu1 %v2511_v29 }
 0x227   : > { %1284 = vmatpush.msra.mxu2 %v2514_v30  ;;  %1304 = vmatpush.msra.mxu3 %v2517_v31 }
 0x228   : > { %1245 = vmatpush.msra.mxu0 %v2496_v24  ;;  %1265 = vmatpush.msra.mxu1 %v2499_v25 }
 0x229   : > { %1285 = vmatpush.msra.mxu2 %v2502_v26  ;;  %1305 = vmatpush.msra.mxu3 %v2505_v27 }
 0x22a   : > { %1246 = vmatpush.msra.mxu0 %v2484_v20  ;;  %1266 = vmatpush.msra.mxu1 %v2487_v21 }
 0x22b   : > { %1286 = vmatpush.msra.mxu2 %v2490_v22  ;;  %1306 = vmatpush.msra.mxu3 %v2493_v23 }
 0x22c   : > { %1247 = vmatpush.msra.mxu0 %v2472_v16  ;;  %1267 = vmatpush.msra.mxu1 %v3653_v4 }
 0x22d   : > { %1287 = vmatpush.msra.mxu2 %v2478_v18  ;;  %1307 = vmatpush.msra.mxu3 %v2481_v19 }
 0x22e   : > { %1248 = vmatpush.msra.mxu0 %v3656_v15  ;;  %1268 = vmatpush.msra.mxu1 %v3657_v11 }
 0x22f   : > { %1288 = vmatpush.msra.mxu2 %v3655_v14  ;;  %1308 = vmatpush.msra.mxu3 %v3654_v12  ;;  %v992_v14 = vld [vmem:[#allocation2 + $0x18] sm:$0xff] }
 0x230   : > { %1249 = vmatpush.msra.mxu0 %v3660_v6  ;;  %1269 = vmatpush.msra.mxu1 %v3661_v3  ;;  %v989_v3 = vld [vmem:[#allocation2 + $0xb0] sm:$0xff] }
 0x231   : > { %1289 = vmatpush.msra.mxu2 %v3659_v9  ;;  %1309 = vmatpush.msra.mxu3 %v3670_v10  ;;  %v990_v9 = vld [vmem:[#allocation2] sm:$0xff] }
 0x232   : > { %1250 = vmatpush.msra.mxu0 %v3664_v0  ;;  %1270 = vmatpush.msra.mxu1 %v3665_v7  ;;  %v991_v7 = vld [vmem:[#allocation2 + $0xd8] sm:$0xff] }
 0x233   : > { %1290 = vmatpush.msra.mxu2 %v3663_v8  ;;  %1310 = vmatpush.msra.mxu3 %v3662_v5 }
 0x234   : > { %1251 = vmatpush.msra.mxu0 %v3668_v13  ;;  %1271 = vmatpush.msra.mxu1 %v3669_v17 }
 0x235   : > { %1291 = vmatpush.msra.mxu2 %v3667_v1  ;;  %1311 = vmatpush.msra.mxu3 %v3666_v2 }
 0x272   : > { %v1010_v6 = vpop.f32.mrf.mxu0  ;;  %v1030_v10 = vpop.f32.mrf.mxu1 }
 0x273   : > { %v1073_v12 = vadd.f32 %v1010_v6, %v989_v3  ;;  %v1074_v0 = vadd.f32 %v1030_v10, %v990_v9  ;;  %v3675_v10 = vld [vmem:[#allocation16_spill] sm:$0xff] }
 0x275   : > { %v1077_v11 = vmul.f32 1.442695, %v1073_v12  ;;  %v1079_v8 = vmul.f32 1.442695, %v1074_v0 }
 0x276   : > { %v1070_v15 = vpop.f32.mrf.mxu3  ;;  %v1050_v5 = vpop.f32.mrf.mxu2 }
 0x277   : > { %v1076_v19 = vadd.f32 %v1070_v15, %v992_v14  ;;  %v1075_v13 = vadd.f32 %v1050_v5, %v991_v7  ;;  %2232 = vpow2.f32 %v1077_v11 }
 0x278   : > { %2234 = vpow2.f32 %v1079_v8 }
 0x279   : > { %v2185_v17 = vmul.f32 -1.442695, %v1076_v19  ;;  %2236 = vtanh.f32 %v1075_v13  ;;  %v3674_v13 = vld [vmem:[#allocation23_spill] sm:$0xff] }
 0x27b   : > { %2238 = vpow2.f32 %v2185_v17 }
 0x27d   : > { %v2233_v2 = vpop.eup %2232 }
 0x27e   : > { %v2235_v1 = vpop.eup %2234 }
 0x27f   : > { %v2237_v18 = vpop.eup %2236  ;;  %v1101_v9 = vmul.f32 0.0, %v2235_v1  ;;  %v3673_v1 = vld [vmem:[#allocation22_spill] sm:$0xff] }
 0x280   : > { %v1102_v6 = vmul.f32 %v2237_v18, %v2233_v2  ;;  %v3672_v2 = vld [vmem:[#allocation21_spill] sm:$0xff] }
 0x281   : > { %v2239_v4 = vpop.eup %2238 }
 0x282   : > { %v1085_v16 = vadd.f32 1.0, %v2239_v4  ;;  %v3199_v3 = vadd.f32 %v1102_v6, %v1101_v9  ;;  %v3676_v9 = vld [vmem:[#allocation17_spill] sm:$0xff]  ;;  %v3677_v6 = vld [vmem:[#allocation18_spill] sm:$0xff] }
 0x284   : > { %2240 = vrcp.f32 %v1085_v16  ;;  %v1097_v15 = vand.u32 2147483648, %v1085_v16  ;;  %v1095_v11 = vand.u32 2147483647, %v1085_v16  ;;  %vm1091_vm2 = vweird.f32 %v1085_v16 }
 0x285   : > { %2242 = vtanh.f32 %v3199_v3 }
 0x286   : > { %v1098_v8 = vor.u32 1.1754944e-38, %v1097_v15  ;;  %vm1096_vm4 = vcmp.eq.f32.partialorder %v1095_v11, 8.507059e+37  ;;  %v3681_v15 = vld [vmem:[#allocation14_spill] sm:$0xff]  ;;  %v3683_v11 = vld [vmem:[#allocation8_spill] sm:$0xff] }
 0x28a   : > { %v2241_v12 = vpop.eup %2240 }
 0x28b   : > { %v1087_v0 = vmul.f32 %v2241_v12, %v1085_v16  ;;  %vm1092_vm1 = vweird.f32 %v2241_v12  ;;  %v2243_v5 = vpop.eup %2242  ;;  %v3671_v16 = vld [vmem:[#allocation20_spill] sm:$0xff] }
 0x28c   : > { %vm1093_vm3 = vmor %vm1091_vm2, %vm1092_vm1 }
 0x28d   : > { %v1088_v14 = vsub.f32 1.0, %v1087_v0  ;;  %v3679_v0 = vld [vmem:[#allocation12_spill] sm:$0xff] }
 0x28f   : > { %v1089_v19 = vmul.f32 %v2241_v12, %v1088_v14  ;;  %v3680_v14 = vld [vmem:[#allocation13_spill] sm:$0xff] }
 0x291   : > { %v1090_v17 = vadd.f32 %v2241_v12, %v1089_v19  ;;  %v3682_v19 = vld [vmem:[#allocation15_spill] sm:$0xff] }
 0x293   : > { %v1094_v4 = vsel %vm1093_vm3, %v2241_v12, %v1090_v17  ;;  %v3678_v12 = vld [vmem:[#allocation19_spill] sm:$0xff]  ;;  %v3684_v17 = vld [vmem:[#allocation9_spill] sm:$0xff] }
 0x294   : > { %v1099_v7 = vsel %vm1096_vm4, %v1098_v8, %v1094_v4  ;;  %v3686_v8 = vld [vmem:[#allocation11_spill] sm:$0xff]  ;;  %v3687_v4 = vld [vmem:[#allocation4_spill] sm:$0xff] }
 0x295   : > { %v1105_v18 = vmul.f32 %v2243_v5, %v1099_v7  ;;  %v3685_v5 = vld [vmem:[#allocation10_spill] sm:$0xff]  ;;  %v3688_v7 = vld [vmem:[#allocation5_spill] sm:$0xff] }
 0x297   : > { %1106 = vst [vmem:[%s3584_s5] sm:$0xff] %v1105_v18  ;;  %1130 = vmatmul.f32.vlgmr.msrb.gmra.mxu0 %v1105_v18  ;;  %1150 = vmatmul.f32.vlgmr.msrb.gmra.mxu1 %v1105_v18 }
 0x298   : > { %1170 = vmatmul.f32.vlgmr.msrb.gmra.mxu2 %v1105_v18  ;;  %1190 = vmatmul.f32.vlgmr.msrb.gmra.mxu3 %v1105_v18  ;;  %v3689_v18 = vld [vmem:[#allocation6_spill] sm:$0xff] }
 0x299   : > { %1358 = vmatpush.msrb.mxu0 %v2608_v60  ;;  %1378 = vmatpush.msrb.mxu1 %v2611_v61 }
 0x29a   : > { %1398 = vmatpush.msrb.mxu2 %v2614_v62  ;;  %1418 = vmatpush.msrb.mxu3 %v2617_v63 }
 0x29b   : > { %1359 = vmatpush.msrb.mxu0 %v2596_v56  ;;  %1379 = vmatpush.msrb.mxu1 %v2599_v57 }
 0x29c   : > { %1399 = vmatpush.msrb.mxu2 %v2602_v58  ;;  %1419 = vmatpush.msrb.mxu3 %v2605_v59 }
 0x29d   : > { %1360 = vmatpush.msrb.mxu0 %v2581_v52  ;;  %1380 = vmatpush.msrb.mxu1 %v2584_v53 }
 0x29e   : > { %1400 = vmatpush.msrb.mxu2 %v2590_v54  ;;  %1420 = vmatpush.msrb.mxu3 %v2593_v55 }
 0x29f   : > { %1361 = vmatpush.msrb.mxu0 %v2569_v48  ;;  %1381 = vmatpush.msrb.mxu1 %v2572_v49 }
 0x2a0   : > { %1401 = vmatpush.msrb.mxu2 %v2575_v50  ;;  %1421 = vmatpush.msrb.mxu3 %v2578_v51 }
 0x2a1   : > { %1362 = vmatpush.msrb.mxu0 %v2556_v44  ;;  %1382 = vmatpush.msrb.mxu1 %v2560_v45 }
 0x2a2   : > { %1402 = vmatpush.msrb.mxu2 %v2563_v46  ;;  %1422 = vmatpush.msrb.mxu3 %v2566_v47 }
 0x2a3   : > { %1363 = vmatpush.msrb.mxu0 %v2544_v40  ;;  %1383 = vmatpush.msrb.mxu1 %v2547_v41 }
 0x2a4   : > { %1403 = vmatpush.msrb.mxu2 %v2550_v42  ;;  %1423 = vmatpush.msrb.mxu3 %v2553_v43 }
 0x2a5   : > { %1364 = vmatpush.msrb.mxu0 %v2532_v36  ;;  %1384 = vmatpush.msrb.mxu1 %v2535_v37 }
 0x2a6   : > { %1404 = vmatpush.msrb.mxu2 %v2538_v38  ;;  %1424 = vmatpush.msrb.mxu3 %v2541_v39 }
 0x2a7   : > { %1365 = vmatpush.msrb.mxu0 %v2520_v32  ;;  %1385 = vmatpush.msrb.mxu1 %v2523_v33 }
 0x2a8   : > { %1405 = vmatpush.msrb.mxu2 %v2526_v34  ;;  %1425 = vmatpush.msrb.mxu3 %v2529_v35 }
 0x2a9   : > { %1366 = vmatpush.msrb.mxu0 %v2508_v28  ;;  %1386 = vmatpush.msrb.mxu1 %v2511_v29 }
 0x2aa   : > { %1406 = vmatpush.msrb.mxu2 %v2514_v30  ;;  %1426 = vmatpush.msrb.mxu3 %v2517_v31 }
 0x2ab   : > { %1367 = vmatpush.msrb.mxu0 %v2496_v24  ;;  %1387 = vmatpush.msrb.mxu1 %v2499_v25 }
 0x2ac   : > { %1407 = vmatpush.msrb.mxu2 %v2502_v26  ;;  %1427 = vmatpush.msrb.mxu3 %v2505_v27 }
 0x2ad   : > { %1368 = vmatpush.msrb.mxu0 %v2484_v20  ;;  %1388 = vmatpush.msrb.mxu1 %v2487_v21 }
 0x2ae   : > { %1408 = vmatpush.msrb.mxu2 %v2490_v22  ;;  %1428 = vmatpush.msrb.mxu3 %v2493_v23 }
 0x2af   : > { %1369 = vmatpush.msrb.mxu0 %v3671_v16  ;;  %1389 = vmatpush.msrb.mxu1 %v3672_v2 }
 0x2b0   : > { %1409 = vmatpush.msrb.mxu2 %v3673_v1  ;;  %1429 = vmatpush.msrb.mxu3 %v3674_v13 }
 0x2b1   : > { %1370 = vmatpush.msrb.mxu0 %v3675_v10  ;;  %1390 = vmatpush.msrb.mxu1 %v3676_v9 }
 0x2b2   : > { %1410 = vmatpush.msrb.mxu2 %v3677_v6  ;;  %1430 = vmatpush.msrb.mxu3 %v3678_v12  ;;  %v1113_v12 = vld [vmem:[#allocation2 + $0x48] sm:$0xff] }
 0x2b3   : > { %1371 = vmatpush.msrb.mxu0 %v3679_v0  ;;  %1391 = vmatpush.msrb.mxu1 %v3680_v14  ;;  %v3690_v0 = vld [vmem:[#allocation7_spill] sm:$0xff]  ;;  %v1110_v14 = vld [vmem:[#allocation2 + $0x50] sm:$0xff] }
 0x2b4   : > { %1411 = vmatpush.msrb.mxu2 %v3681_v15  ;;  %1431 = vmatpush.msrb.mxu3 %v3682_v19  ;;  %v1111_v19 = vld [vmem:[#allocation2 + $0x68] sm:$0xff] }
 0x2b5   : > { %1372 = vmatpush.msrb.mxu0 %v3683_v11  ;;  %1392 = vmatpush.msrb.mxu1 %v3684_v17  ;;  %v1112_v17 = vld [vmem:[#allocation2 + $0x30] sm:$0xff] }
 0x2b6   : > { %1412 = vmatpush.msrb.mxu2 %v3685_v5  ;;  %1432 = vmatpush.msrb.mxu3 %v3686_v8 }
 0x2b7   : > { %1373 = vmatpush.msrb.mxu0 %v3687_v4  ;;  %1393 = vmatpush.msrb.mxu1 %v3688_v7 }
 0x2b8   : > { %1413 = vmatpush.msrb.mxu2 %v3689_v18  ;;  %1433 = vmatpush.msrb.mxu3 %v3690_v0 }
 0x314   : > { %v1131_v15 = vpop.f32.mrf.mxu0  ;;  %v1151_v6 = vpop.f32.mrf.mxu1 }
 0x315   : > { %v1194_v9 = vadd.f32 %v1131_v15, %v1110_v14  ;;  %v1195_v13 = vadd.f32 %v1151_v6, %v1111_v19 }
 0x317   : > { %v1198_v4 = vmul.f32 1.442695, %v1194_v9  ;;  %v1200_v7 = vmul.f32 1.442695, %v1195_v13 }
 0x31b   : > { %v1191_v11 = vpop.f32.mrf.mxu3  ;;  %v1171_v10 = vpop.f32.mrf.mxu2 }
 0x31c   : > { %v1197_v5 = vadd.f32 %v1191_v11, %v1113_v12  ;;  %v1196_v1 = vadd.f32 %v1171_v10, %v1112_v17  ;;  %v3693_v17 = vld [vmem:[#allocation20_spill] sm:$0xff] }
 0x31e   : > { %v2186_v8 = vmul.f32 -1.442695, %v1197_v5  ;;  %v3694_v5 = vld [vmem:[#allocation21_spill] sm:$0xff] }
 0x320   : > { %2244 = vpow2.f32 %v2186_v8  ;;  %v3695_v8 = vld [vmem:[#allocation22_spill] sm:$0xff] }
 0x321   : > { %2246 = vtanh.f32 %v1196_v1 }
 0x322   : > { %2248 = vpow2.f32 %v1198_v4  ;;  %v3696_v4 = vld [vmem:[#allocation23_spill] sm:$0xff] }
 0x323   : > { %2250 = vpow2.f32 %v1200_v7  ;;  %v3697_v7 = vld [vmem:[#allocation16_spill] sm:$0xff] }
 0x326   : > { %v2245_v0 = vpop.eup %2244 }
 0x327   : > { %v1206_v18 = vadd.f32 1.0, %v2245_v0  ;;  %v2247_v2 = vpop.eup %2246 }
 0x328   : > { %v2249_v16 = vpop.eup %2248 }
 0x329   : > { %2252 = vrcp.f32 %v1206_v18  ;;  %v2251_v23 = vpop.eup %2250  ;;  %v1223_v22 = vmul.f32 %v2249_v16, %v2247_v2  ;;  %v1218_v13 = vand.u32 2147483648, %v1206_v18  ;;  %v1216_v9 = vand.u32 2147483647, %v1206_v18 }
 0x32a   : > { %v1222_v14 = vmul.f32 %v2251_v23, %v3199_v3  ;;  %vm1212_vm6 = vweird.f32 %v1206_v18  ;;  %v3692_v3 = vld [vmem:[#allocation25_spill] sm:$0xff] }
 0x32b   : > { %v1219_v19 = vor.u32 1.1754944e-38, %v1218_v13  ;;  %vm1217_vm8 = vcmp.eq.f32.partialorder %v1216_v9, 8.507059e+37  ;;  %v3703_v13 = vld [vmem:[#allocation14_spill] sm:$0xff]  ;;  %v3705_v9 = vld [vmem:[#allocation8_spill] sm:$0xff] }
 0x32c   : > { %v3270_v12 = vadd.f32 %v1223_v22, %v1222_v14  ;;  %v3691_v22 = vld [vmem:[#allocation24_spill] sm:$0xff]  ;;  %v3699_v14 = vld [vmem:[#allocation18_spill] sm:$0xff] }
 0x32e   : > { %2254 = vtanh.f32 %v3270_v12 }
 0x32f   : > { %v2253_v15 = vpop.eup %2252 }
 0x330   : > { %v1208_v6 = vmul.f32 %v2253_v15, %v1206_v18  ;;  %vm1213_vm5 = vweird.f32 %v2253_v15  ;;  %v3698_v18 = vld [vmem:[#allocation17_spill] sm:$0xff] }
 0x331   : > { %vm1214_vm7 = vmor %vm1212_vm6, %vm1213_vm5 }
 0x332   : > { %v1209_v10 = vsub.f32 1.0, %v1208_v6  ;;  %v3701_v6 = vld [vmem:[#allocation12_spill] sm:$0xff] }
 0x334   : > { %v1210_v1 = vmul.f32 %v2253_v15, %v1209_v10  ;;  %v2255_v16 = vpop.eup %2254  ;;  %v3702_v10 = vld [vmem:[#allocation13_spill] sm:$0xff] }
 0x336   : > { %v1211_v0 = vadd.f32 %v2253_v15, %v1210_v1  ;;  %v3704_v1 = vld [vmem:[#allocation15_spill] sm:$0xff] }
 0x338   : > { %v1215_v11 = vsel %vm1214_vm7, %v2253_v15, %v1211_v0  ;;  %v3700_v15 = vld [vmem:[#allocation19_spill] sm:$0xff]  ;;  %v3706_v0 = vld [vmem:[#allocation9_spill] sm:$0xff] }
 0x339   : > { %v1220_v2 = vsel %vm1217_vm8, %v1219_v19, %v1215_v11  ;;  %v3707_v19 = vld [vmem:[#allocation10_spill] sm:$0xff]  ;;  %v3708_v11 = vld [vmem:[#allocation11_spill] sm:$0xff] }
 0x33a   : > { %v1226_v23 = vmul.f32 %v2255_v16, %v1220_v2  ;;  %v3709_v16 = vld [vmem:[#allocation4_spill] sm:$0xff]  ;;  %v3710_v2 = vld [vmem:[#allocation5_spill] sm:$0xff] }
 0x33c   : > { %2187 = vst [vmem:[%s3584_s5 + $0x8] sm:$0xff] %v1226_v23  ;;  %1252 = vmatmul.f32.vlgmr.msra.gmra.mxu0 %v1226_v23  ;;  %1272 = vmatmul.f32.vlgmr.msra.gmra.mxu1 %v1226_v23 }
 0x33d   : > { %1292 = vmatmul.f32.vlgmr.msra.gmra.mxu2 %v1226_v23  ;;  %1312 = vmatmul.f32.vlgmr.msra.gmra.mxu3 %v1226_v23  ;;  %v3711_v23 = vld [vmem:[#allocation6_spill] sm:$0xff] }
 0x33e   : > { %1480 = vmatpush.msra.mxu0 %v2608_v60  ;;  %1500 = vmatpush.msra.mxu1 %v2611_v61 }
 0x33f   : > { %1520 = vmatpush.msra.mxu2 %v2614_v62  ;;  %1540 = vmatpush.msra.mxu3 %v2617_v63 }
 0x340   : > { %1481 = vmatpush.msra.mxu0 %v2596_v56  ;;  %1501 = vmatpush.msra.mxu1 %v2599_v57 }
 0x341   : > { %1521 = vmatpush.msra.mxu2 %v2602_v58  ;;  %1541 = vmatpush.msra.mxu3 %v2605_v59 }
 0x342   : > { %1482 = vmatpush.msra.mxu0 %v2581_v52  ;;  %1502 = vmatpush.msra.mxu1 %v2584_v53 }
 0x343   : > { %1522 = vmatpush.msra.mxu2 %v2590_v54  ;;  %1542 = vmatpush.msra.mxu3 %v2593_v55 }
 0x344   : > { %1483 = vmatpush.msra.mxu0 %v2569_v48  ;;  %1503 = vmatpush.msra.mxu1 %v2572_v49 }
 0x345   : > { %1523 = vmatpush.msra.mxu2 %v2575_v50  ;;  %1543 = vmatpush.msra.mxu3 %v2578_v51 }
 0x346   : > { %1484 = vmatpush.msra.mxu0 %v2556_v44  ;;  %1504 = vmatpush.msra.mxu1 %v2560_v45 }
 0x347   : > { %1524 = vmatpush.msra.mxu2 %v2563_v46  ;;  %1544 = vmatpush.msra.mxu3 %v2566_v47 }
 0x348   : > { %1485 = vmatpush.msra.mxu0 %v2544_v40  ;;  %1505 = vmatpush.msra.mxu1 %v2547_v41 }
 0x349   : > { %1525 = vmatpush.msra.mxu2 %v2550_v42  ;;  %1545 = vmatpush.msra.mxu3 %v2553_v43 }
 0x34a   : > { %1486 = vmatpush.msra.mxu0 %v2532_v36  ;;  %1506 = vmatpush.msra.mxu1 %v2535_v37 }
 0x34b   : > { %1526 = vmatpush.msra.mxu2 %v2538_v38  ;;  %1546 = vmatpush.msra.mxu3 %v2541_v39 }
 0x34c   : > { %1487 = vmatpush.msra.mxu0 %v2520_v32  ;;  %1507 = vmatpush.msra.mxu1 %v2523_v33 }
 0x34d   : > { %1527 = vmatpush.msra.mxu2 %v2526_v34  ;;  %1547 = vmatpush.msra.mxu3 %v2529_v35 }
 0x34e   : > { %1488 = vmatpush.msra.mxu0 %v2508_v28  ;;  %1508 = vmatpush.msra.mxu1 %v2511_v29 }
 0x34f   : > { %1528 = vmatpush.msra.mxu2 %v2514_v30  ;;  %1548 = vmatpush.msra.mxu3 %v2517_v31 }
 0x350   : > { %1489 = vmatpush.msra.mxu0 %v2496_v24  ;;  %1509 = vmatpush.msra.mxu1 %v2499_v25 }
 0x351   : > { %1529 = vmatpush.msra.mxu2 %v2502_v26  ;;  %1549 = vmatpush.msra.mxu3 %v2505_v27 }
 0x352   : > { %1490 = vmatpush.msra.mxu0 %v2484_v20  ;;  %1510 = vmatpush.msra.mxu1 %v2487_v21 }
 0x353   : > { %1530 = vmatpush.msra.mxu2 %v3691_v22  ;;  %1550 = vmatpush.msra.mxu3 %v3692_v3 }
 0x354   : > { %1491 = vmatpush.msra.mxu0 %v3693_v17  ;;  %1511 = vmatpush.msra.mxu1 %v3694_v5 }
 0x355   : > { %1531 = vmatpush.msra.mxu2 %v3695_v8  ;;  %1551 = vmatpush.msra.mxu3 %v3696_v4 }
 0x356   : > { %1492 = vmatpush.msra.mxu0 %v3697_v7  ;;  %1512 = vmatpush.msra.mxu1 %v3698_v18 }
 0x357   : > { %1532 = vmatpush.msra.mxu2 %v3699_v14  ;;  %1552 = vmatpush.msra.mxu3 %v3700_v15  ;;  %v1235_v15 = vld [vmem:[#allocation2 + $0xb8] sm:$0xff] }
 0x358   : > { %1493 = vmatpush.msra.mxu0 %v3701_v6  ;;  %1513 = vmatpush.msra.mxu1 %v3702_v10  ;;  %v3712_v6 = vld [vmem:[#allocation7_spill] sm:$0xff]  ;;  %v1232_v10 = vld [vmem:[#allocation2 + $0x80] sm:$0xff] }
 0x359   : > { %1533 = vmatpush.msra.mxu2 %v3703_v13  ;;  %1553 = vmatpush.msra.mxu3 %v3704_v1  ;;  %v1233_v1 = vld [vmem:[#allocation2 + $0x88] sm:$0xff] }
 0x35a   : > { %1494 = vmatpush.msra.mxu0 %v3705_v9  ;;  %1514 = vmatpush.msra.mxu1 %v3706_v0  ;;  %v1234_v0 = vld [vmem:[#allocation2 + $0xe8] sm:$0xff] }
 0x35b   : > { %1534 = vmatpush.msra.mxu2 %v3707_v19  ;;  %1554 = vmatpush.msra.mxu3 %v3708_v11 }
 0x35c   : > { %1495 = vmatpush.msra.mxu0 %v3709_v16  ;;  %1515 = vmatpush.msra.mxu1 %v3710_v2 }
 0x35d   : > { %1535 = vmatpush.msra.mxu2 %v3711_v23  ;;  %1555 = vmatpush.msra.mxu3 %v3712_v6 }
 0x3b9   : > { %v1253_v13 = vpop.f32.mrf.mxu0  ;;  %v1273_v14 = vpop.f32.mrf.mxu1 }
 0x3ba   : > { %v1316_v18 = vadd.f32 %v1253_v13, %v1232_v10  ;;  %v1317_v4 = vadd.f32 %v1273_v14, %v1233_v1 }
 0x3bc   : > { %v1320_v16 = vmul.f32 1.442695, %v1316_v18  ;;  %v1322_v2 = vmul.f32 1.442695, %v1317_v4 }
 0x3c0   : > { %v1313_v9 = vpop.f32.mrf.mxu3  ;;  %v1293_v7 = vpop.f32.mrf.mxu2 }
 0x3c1   : > { %v1319_v19 = vadd.f32 %v1313_v9, %v1235_v15  ;;  %v1318_v8 = vadd.f32 %v1293_v7, %v1234_v0  ;;  %v3715_v0 = vld [vmem:[#allocation20_spill] sm:$0xff] }
 0x3c3   : > { %v2188_v11 = vmul.f32 -1.442695, %v1319_v19  ;;  %v3716_v19 = vld [vmem:[#allocation21_spill] sm:$0xff] }
 0x3c5   : > { %2256 = vpow2.f32 %v2188_v11  ;;  %v3717_v11 = vld [vmem:[#allocation22_spill] sm:$0xff] }
 0x3c6   : > { %2258 = vtanh.f32 %v1318_v8 }
 0x3c7   : > { %2260 = vpow2.f32 %v1320_v16  ;;  %v3718_v16 = vld [vmem:[#allocation23_spill] sm:$0xff] }
 0x3c8   : > { %2262 = vpow2.f32 %v1322_v2  ;;  %v3719_v2 = vld [vmem:[#allocation16_spill] sm:$0xff] }
 0x3cb   : > { %v2257_v6 = vpop.eup %2256 }
 0x3cc   : > { %v1328_v23 = vadd.f32 1.0, %v2257_v6  ;;  %v2259_v5 = vpop.eup %2258 }
 0x3cd   : > { %v2261_v17 = vpop.eup %2260 }
 0x3ce   : > { %2264 = vrcp.f32 %v1328_v23  ;;  %v2263_v3 = vpop.eup %2262  ;;  %v1345_v22 = vmul.f32 %v2261_v17, %v2259_v5  ;;  %v1340_v4 = vand.u32 2147483648, %v1328_v23  ;;  %v1338_v18 = vand.u32 2147483647, %v1328_v23 }
 0x3cf   : > { %v1344_v10 = vmul.f32 %v2263_v3, %v3270_v12  ;;  %vm1334_vm10 = vweird.f32 %v1328_v23  ;;  %v3714_v3 = vld [vmem:[#allocation25_spill] sm:$0xff] }
 0x3d0   : > { %v1341_v1 = vor.u32 1.1754944e-38, %v1340_v4  ;;  %vm1339_vm12 = vcmp.eq.f32.partialorder %v1338_v18, 8.507059e+37  ;;  %v3725_v4 = vld [vmem:[#allocation14_spill] sm:$0xff]  ;;  %v3727_v18 = vld [vmem:[#allocation8_spill] sm:$0xff] }
 0x3d1   : > { %v3341_v15 = vadd.f32 %v1345_v22, %v1344_v10  ;;  %v3713_v22 = vld [vmem:[#allocation24_spill] sm:$0xff]  ;;  %v3721_v10 = vld [vmem:[#allocation18_spill] sm:$0xff] }
 0x3d3   : > { %2266 = vtanh.f32 %v3341_v15 }
 0x3d4   : > { %v2265_v13 = vpop.eup %2264 }
 0x3d5   : > { %v1330_v14 = vmul.f32 %v2265_v13, %v1328_v23  ;;  %vm1335_vm9 = vweird.f32 %v2265_v13  ;;  %v3720_v23 = vld [vmem:[#allocation17_spill] sm:$0xff] }
 0x3d6   : > { %vm1336_vm11 = vmor %vm1334_vm10, %vm1335_vm9 }
 0x3d7   : > { %v1331_v7 = vsub.f32 1.0, %v1330_v14  ;;  %v3723_v14 = vld [vmem:[#allocation12_spill] sm:$0xff] }
 0x3d9   : > { %v1332_v8 = vmul.f32 %v2265_v13, %v1331_v7  ;;  %v2267_v17 = vpop.eup %2266  ;;  %v3724_v7 = vld [vmem:[#allocation13_spill] sm:$0xff] }
 0x3db   : > { %v1333_v6 = vadd.f32 %v2265_v13, %v1332_v8  ;;  %v3726_v8 = vld [vmem:[#allocation15_spill] sm:$0xff] }
 0x3dd   : > { %v1337_v9 = vsel %vm1336_vm11, %v2265_v13, %v1333_v6  ;;  %v3722_v13 = vld [vmem:[#allocation19_spill] sm:$0xff]  ;;  %v3728_v6 = vld [vmem:[#allocation9_spill] sm:$0xff] }
 0x3de   : > { %v1342_v5 = vsel %vm1339_vm12, %v1341_v1, %v1337_v9  ;;  %v3729_v1 = vld [vmem:[#allocation10_spill] sm:$0xff]  ;;  %v3730_v9 = vld [vmem:[#allocation11_spill] sm:$0xff] }
 0x3df   : > { %v1348_v12 = vmul.f32 %v2267_v17, %v1342_v5  ;;  %v3731_v17 = vld [vmem:[#allocation4_spill] sm:$0xff]  ;;  %v3732_v5 = vld [vmem:[#allocation5_spill] sm:$0xff] }
 0x3e1   : > { %2189 = vst [vmem:[%s3584_s5 + $0x10] sm:$0xff] %v1348_v12  ;;  %1374 = vmatmul.f32.vlgmr.msrb.gmra.mxu0 %v1348_v12  ;;  %1394 = vmatmul.f32.vlgmr.msrb.gmra.mxu1 %v1348_v12 }
 0x3e2   : > { %1414 = vmatmul.f32.vlgmr.msrb.gmra.mxu2 %v1348_v12  ;;  %1434 = vmatmul.f32.vlgmr.msrb.gmra.mxu3 %v1348_v12  ;;  %v3733_v12 = vld [vmem:[#allocation6_spill] sm:$0xff] }
 0x3e3   : > { %1602 = vmatpush.msrb.mxu0 %v2608_v60  ;;  %1622 = vmatpush.msrb.mxu1 %v2611_v61 }
 0x3e4   : > { %1642 = vmatpush.msrb.mxu2 %v2614_v62  ;;  %1662 = vmatpush.msrb.mxu3 %v2617_v63 }
 0x3e5   : > { %1603 = vmatpush.msrb.mxu0 %v2596_v56  ;;  %1623 = vmatpush.msrb.mxu1 %v2599_v57 }
 0x3e6   : > { %1643 = vmatpush.msrb.mxu2 %v2602_v58  ;;  %1663 = vmatpush.msrb.mxu3 %v2605_v59 }
 0x3e7   : > { %1604 = vmatpush.msrb.mxu0 %v2581_v52  ;;  %1624 = vmatpush.msrb.mxu1 %v2584_v53 }
 0x3e8   : > { %1644 = vmatpush.msrb.mxu2 %v2590_v54  ;;  %1664 = vmatpush.msrb.mxu3 %v2593_v55 }
 0x3e9   : > { %1605 = vmatpush.msrb.mxu0 %v2569_v48  ;;  %1625 = vmatpush.msrb.mxu1 %v2572_v49 }
 0x3ea   : > { %1645 = vmatpush.msrb.mxu2 %v2575_v50  ;;  %1665 = vmatpush.msrb.mxu3 %v2578_v51 }
 0x3eb   : > { %1606 = vmatpush.msrb.mxu0 %v2556_v44  ;;  %1626 = vmatpush.msrb.mxu1 %v2560_v45 }
 0x3ec   : > { %1646 = vmatpush.msrb.mxu2 %v2563_v46  ;;  %1666 = vmatpush.msrb.mxu3 %v2566_v47 }
 0x3ed   : > { %1607 = vmatpush.msrb.mxu0 %v2544_v40  ;;  %1627 = vmatpush.msrb.mxu1 %v2547_v41 }
 0x3ee   : > { %1647 = vmatpush.msrb.mxu2 %v2550_v42  ;;  %1667 = vmatpush.msrb.mxu3 %v2553_v43 }
 0x3ef   : > { %1608 = vmatpush.msrb.mxu0 %v2532_v36  ;;  %1628 = vmatpush.msrb.mxu1 %v2535_v37 }
 0x3f0   : > { %1648 = vmatpush.msrb.mxu2 %v2538_v38  ;;  %1668 = vmatpush.msrb.mxu3 %v2541_v39 }
 0x3f1   : > { %1609 = vmatpush.msrb.mxu0 %v2520_v32  ;;  %1629 = vmatpush.msrb.mxu1 %v2523_v33 }
 0x3f2   : > { %1649 = vmatpush.msrb.mxu2 %v2526_v34  ;;  %1669 = vmatpush.msrb.mxu3 %v2529_v35 }
 0x3f3   : > { %1610 = vmatpush.msrb.mxu0 %v2508_v28  ;;  %1630 = vmatpush.msrb.mxu1 %v2511_v29 }
 0x3f4   : > { %1650 = vmatpush.msrb.mxu2 %v2514_v30  ;;  %1670 = vmatpush.msrb.mxu3 %v2517_v31 }
 0x3f5   : > { %1611 = vmatpush.msrb.mxu0 %v2496_v24  ;;  %1631 = vmatpush.msrb.mxu1 %v2499_v25 }
 0x3f6   : > { %1651 = vmatpush.msrb.mxu2 %v2502_v26  ;;  %1671 = vmatpush.msrb.mxu3 %v2505_v27 }
 0x3f7   : > { %1612 = vmatpush.msrb.mxu0 %v2484_v20  ;;  %1632 = vmatpush.msrb.mxu1 %v2487_v21 }
 0x3f8   : > { %1652 = vmatpush.msrb.mxu2 %v3713_v22  ;;  %1672 = vmatpush.msrb.mxu3 %v3714_v3 }
 0x3f9   : > { %1613 = vmatpush.msrb.mxu0 %v3715_v0  ;;  %1633 = vmatpush.msrb.mxu1 %v3716_v19 }
 0x3fa   : > { %1653 = vmatpush.msrb.mxu2 %v3717_v11  ;;  %1673 = vmatpush.msrb.mxu3 %v3718_v16 }
 0x3fb   : > { %1614 = vmatpush.msrb.mxu0 %v3719_v2  ;;  %1634 = vmatpush.msrb.mxu1 %v3720_v23 }
 0x3fc   : > { %1654 = vmatpush.msrb.mxu2 %v3721_v10  ;;  %1674 = vmatpush.msrb.mxu3 %v3722_v13  ;;  %v1357_v13 = vld [vmem:[#allocation2 + $0x78] sm:$0xff] }
 0x3fd   : > { %1615 = vmatpush.msrb.mxu0 %v3723_v14  ;;  %1635 = vmatpush.msrb.mxu1 %v3724_v7  ;;  %v3734_v14 = vld [vmem:[#allocation7_spill] sm:$0xff]  ;;  %v1354_v7 = vld [vmem:[#allocation2 + $0x60] sm:$0xff] }
 0x3fe   : > { %1655 = vmatpush.msrb.mxu2 %v3725_v4  ;;  %1675 = vmatpush.msrb.mxu3 %v3726_v8  ;;  %v1355_v8 = vld [vmem:[#allocation2 + $0xf0] sm:$0xff] }
 0x3ff   : > { %1616 = vmatpush.msrb.mxu0 %v3727_v18  ;;  %1636 = vmatpush.msrb.mxu1 %v3728_v6  ;;  %v1356_v6 = vld [vmem:[#allocation2 + $0x8] sm:$0xff] }
 0x400   : > { %1656 = vmatpush.msrb.mxu2 %v3729_v1  ;;  %1676 = vmatpush.msrb.mxu3 %v3730_v9 }
 0x401   : > { %1617 = vmatpush.msrb.mxu0 %v3731_v17  ;;  %1637 = vmatpush.msrb.mxu1 %v3732_v5 }
 0x402   : > { %1657 = vmatpush.msrb.mxu2 %v3733_v12  ;;  %1677 = vmatpush.msrb.mxu3 %v3734_v14 }
 0x45e   : > { %v1375_v4 = vpop.f32.mrf.mxu0  ;;  %v1395_v10 = vpop.f32.mrf.mxu1 }
 0x45f   : > { %v1438_v23 = vadd.f32 %v1375_v4, %v1354_v7  ;;  %v1439_v16 = vadd.f32 %v1395_v10, %v1355_v8 }
 0x461   : > { %v1442_v17 = vmul.f32 1.442695, %v1438_v23  ;;  %v1444_v5 = vmul.f32 1.442695, %v1439_v16 }
 0x465   : > { %v1435_v18 = vpop.f32.mrf.mxu3  ;;  %v1415_v2 = vpop.f32.mrf.mxu2 }
 0x466   : > { %v1441_v1 = vadd.f32 %v1435_v18, %v1357_v13  ;;  %v1440_v11 = vadd.f32 %v1415_v2, %v1356_v6  ;;  %v3737_v6 = vld [vmem:[#allocation20_spill] sm:$0xff] }
 0x468   : > { %v2190_v9 = vmul.f32 -1.442695, %v1441_v1  ;;  %v3738_v1 = vld [vmem:[#allocation21_spill] sm:$0xff] }
 0x46a   : > { %2268 = vpow2.f32 %v2190_v9  ;;  %v3739_v9 = vld [vmem:[#allocation22_spill] sm:$0xff] }
 0x46b   : > { %2270 = vtanh.f32 %v1440_v11 }
 0x46c   : > { %2272 = vpow2.f32 %v1442_v17  ;;  %v3740_v17 = vld [vmem:[#allocation23_spill] sm:$0xff] }
 0x46d   : > { %2274 = vpow2.f32 %v1444_v5  ;;  %v3741_v5 = vld [vmem:[#allocation16_spill] sm:$0xff] }
 0x470   : > { %v2269_v14 = vpop.eup %2268 }
 0x471   : > { %v1450_v12 = vadd.f32 1.0, %v2269_v14  ;;  %v2271_v19 = vpop.eup %2270 }
 0x472   : > { %v2273_v0 = vpop.eup %2272 }
 0x473   : > { %2276 = vrcp.f32 %v1450_v12  ;;  %v2275_v3 = vpop.eup %2274  ;;  %v1467_v22 = vmul.f32 %v2273_v0, %v2271_v19  ;;  %v1462_v16 = vand.u32 2147483648, %v1450_v12  ;;  %v1460_v23 = vand.u32 2147483647, %v1450_v12 }
 0x474   : > { %v1466_v7 = vmul.f32 %v2275_v3, %v3341_v15  ;;  %vm1456_vm14 = vweird.f32 %v1450_v12  ;;  %v3736_v3 = vld [vmem:[#allocation25_spill] sm:$0xff] }
 0x475   : > { %v1463_v8 = vor.u32 1.1754944e-38, %v1462_v16  ;;  %vm1461_vm0 = vcmp.eq.f32.partialorder %v1460_v23, 8.507059e+37  ;;  %v3747_v16 = vld [vmem:[#allocation14_spill] sm:$0xff]  ;;  %v3749_v23 = vld [vmem:[#allocation8_spill] sm:$0xff] }
 0x476   : > { %v3412_v13 = vadd.f32 %v1467_v22, %v1466_v7  ;;  %v3735_v22 = vld [vmem:[#allocation24_spill] sm:$0xff]  ;;  %v3743_v7 = vld [vmem:[#allocation18_spill] sm:$0xff] }
 0x478   : > { %2278 = vtanh.f32 %v3412_v13 }
 0x479   : > { %v2277_v4 = vpop.eup %2276 }
 0x47a   : > { %v1452_v10 = vmul.f32 %v2277_v4, %v1450_v12  ;;  %vm1457_vm13 = vweird.f32 %v2277_v4  ;;  %v3742_v12 = vld [vmem:[#allocation17_spill] sm:$0xff] }
 0x47b   : > { %vm1458_vm15 = vmor %vm1456_vm14, %vm1457_vm13 }
 0x47c   : > { %v1453_v2 = vsub.f32 1.0, %v1452_v10  ;;  %v3745_v10 = vld [vmem:[#allocation12_spill] sm:$0xff] }
 0x47e   : > { %v1454_v11 = vmul.f32 %v2277_v4, %v1453_v2  ;;  %v2279_v0 = vpop.eup %2278  ;;  %v3746_v2 = vld [vmem:[#allocation13_spill] sm:$0xff] }
 0x480   : > { %v1455_v14 = vadd.f32 %v2277_v4, %v1454_v11  ;;  %v3748_v11 = vld [vmem:[#allocation15_spill] sm:$0xff] }
 0x482   : > { %v1459_v18 = vsel %vm1458_vm15, %v2277_v4, %v1455_v14  ;;  %v3744_v4 = vld [vmem:[#allocation19_spill] sm:$0xff]  ;;  %v3750_v14 = vld [vmem:[#allocation9_spill] sm:$0xff] }
 0x483   : > { %v1464_v19 = vsel %vm1461_vm0, %v1463_v8, %v1459_v18  ;;  %v3751_v8 = vld [vmem:[#allocation10_spill] sm:$0xff]  ;;  %v3752_v18 = vld [vmem:[#allocation11_spill] sm:$0xff] }
 0x484   : > { %v1470_v15 = vmul.f32 %v2279_v0, %v1464_v19  ;;  %v3753_v0 = vld [vmem:[#allocation4_spill] sm:$0xff]  ;;  %v3754_v19 = vld [vmem:[#allocation5_spill] sm:$0xff] }
 0x486   : > { %2191 = vst [vmem:[%s3584_s5 + $0x18] sm:$0xff] %v1470_v15  ;;  %1496 = vmatmul.f32.vlgmr.msra.gmra.mxu0 %v1470_v15  ;;  %1516 = vmatmul.f32.vlgmr.msra.gmra.mxu1 %v1470_v15 }
 0x487   : > { %1536 = vmatmul.f32.vlgmr.msra.gmra.mxu2 %v1470_v15  ;;  %1556 = vmatmul.f32.vlgmr.msra.gmra.mxu3 %v1470_v15  ;;  %v3755_v15 = vld [vmem:[#allocation6_spill] sm:$0xff] }
 0x488   : > { %1724 = vmatpush.msra.mxu0 %v2608_v60  ;;  %1744 = vmatpush.msra.mxu1 %v2611_v61 }
 0x489   : > { %1764 = vmatpush.msra.mxu2 %v2614_v62  ;;  %1784 = vmatpush.msra.mxu3 %v2617_v63 }
 0x48a   : > { %1725 = vmatpush.msra.mxu0 %v2596_v56  ;;  %1745 = vmatpush.msra.mxu1 %v2599_v57 }
 0x48b   : > { %1765 = vmatpush.msra.mxu2 %v2602_v58  ;;  %1785 = vmatpush.msra.mxu3 %v2605_v59 }
 0x48c   : > { %1726 = vmatpush.msra.mxu0 %v2581_v52  ;;  %1746 = vmatpush.msra.mxu1 %v2584_v53 }
 0x48d   : > { %1766 = vmatpush.msra.mxu2 %v2590_v54  ;;  %1786 = vmatpush.msra.mxu3 %v2593_v55 }
 0x48e   : > { %1727 = vmatpush.msra.mxu0 %v2569_v48  ;;  %1747 = vmatpush.msra.mxu1 %v2572_v49 }
 0x48f   : > { %1767 = vmatpush.msra.mxu2 %v2575_v50  ;;  %1787 = vmatpush.msra.mxu3 %v2578_v51 }
 0x490   : > { %1728 = vmatpush.msra.mxu0 %v2556_v44  ;;  %1748 = vmatpush.msra.mxu1 %v2560_v45 }
 0x491   : > { %1768 = vmatpush.msra.mxu2 %v2563_v46  ;;  %1788 = vmatpush.msra.mxu3 %v2566_v47 }
 0x492   : > { %1729 = vmatpush.msra.mxu0 %v2544_v40  ;;  %1749 = vmatpush.msra.mxu1 %v2547_v41 }
 0x493   : > { %1769 = vmatpush.msra.mxu2 %v2550_v42  ;;  %1789 = vmatpush.msra.mxu3 %v2553_v43 }
 0x494   : > { %1730 = vmatpush.msra.mxu0 %v2532_v36  ;;  %1750 = vmatpush.msra.mxu1 %v2535_v37 }
 0x495   : > { %1770 = vmatpush.msra.mxu2 %v2538_v38  ;;  %1790 = vmatpush.msra.mxu3 %v2541_v39 }
 0x496   : > { %1731 = vmatpush.msra.mxu0 %v2520_v32  ;;  %1751 = vmatpush.msra.mxu1 %v2523_v33 }
 0x497   : > { %1771 = vmatpush.msra.mxu2 %v2526_v34  ;;  %1791 = vmatpush.msra.mxu3 %v2529_v35 }
 0x498   : > { %1732 = vmatpush.msra.mxu0 %v2508_v28  ;;  %1752 = vmatpush.msra.mxu1 %v2511_v29 }
 0x499   : > { %1772 = vmatpush.msra.mxu2 %v2514_v30  ;;  %1792 = vmatpush.msra.mxu3 %v2517_v31 }
 0x49a   : > { %1733 = vmatpush.msra.mxu0 %v2496_v24  ;;  %1753 = vmatpush.msra.mxu1 %v2499_v25 }
 0x49b   : > { %1773 = vmatpush.msra.mxu2 %v2502_v26  ;;  %1793 = vmatpush.msra.mxu3 %v2505_v27 }
 0x49c   : > { %1734 = vmatpush.msra.mxu0 %v2484_v20  ;;  %1754 = vmatpush.msra.mxu1 %v2487_v21 }
 0x49d   : > { %1774 = vmatpush.msra.mxu2 %v3735_v22  ;;  %1794 = vmatpush.msra.mxu3 %v3736_v3 }
 0x49e   : > { %1735 = vmatpush.msra.mxu0 %v3737_v6  ;;  %1755 = vmatpush.msra.mxu1 %v3738_v1 }
 0x49f   : > { %1775 = vmatpush.msra.mxu2 %v3739_v9  ;;  %1795 = vmatpush.msra.mxu3 %v3740_v17 }
 0x4a0   : > { %1736 = vmatpush.msra.mxu0 %v3741_v5  ;;  %1756 = vmatpush.msra.mxu1 %v3742_v12 }
 0x4a1   : > { %1776 = vmatpush.msra.mxu2 %v3743_v7  ;;  %1796 = vmatpush.msra.mxu3 %v3744_v4  ;;  %v1479_v4 = vld [vmem:[#allocation2 + $0xc8] sm:$0xff] }
 0x4a2   : > { %1737 = vmatpush.msra.mxu0 %v3745_v10  ;;  %1757 = vmatpush.msra.mxu1 %v3746_v2  ;;  %v3756_v10 = vld [vmem:[#allocation7_spill] sm:$0xff] }
 0x4a3   : > { %1777 = vmatpush.msra.mxu2 %v3747_v16  ;;  %1797 = vmatpush.msra.mxu3 %v3748_v11  ;;  %v1476_v2 = vld [vmem:[#allocation2 + $0x38] sm:$0xff] }
 0x4a4   : > { %1738 = vmatpush.msra.mxu0 %v3749_v23  ;;  %1758 = vmatpush.msra.mxu1 %v3750_v14  ;;  %v1477_v11 = vld [vmem:[#allocation2 + $0x58] sm:$0xff]  ;;  %v1478_v14 = vld [vmem:[#allocation2 + $0x40] sm:$0xff] }
 0x4a5   : > { %1778 = vmatpush.msra.mxu2 %v3751_v8  ;;  %1798 = vmatpush.msra.mxu3 %v3752_v18 }
 0x4a6   : > { %1739 = vmatpush.msra.mxu0 %v3753_v0  ;;  %1759 = vmatpush.msra.mxu1 %v3754_v19 }
 0x4a7   : > { %1779 = vmatpush.msra.mxu2 %v3755_v15  ;;  %1799 = vmatpush.msra.mxu3 %v3756_v10 }
 0x503   : > { %v1497_v16 = vpop.f32.mrf.mxu0  ;;  %v1517_v7 = vpop.f32.mrf.mxu1 }
 0x504   : > { %v1560_v12 = vadd.f32 %v1497_v16, %v1476_v2  ;;  %v1561_v17 = vadd.f32 %v1517_v7, %v1477_v11 }
 0x506   : > { %v1564_v0 = vmul.f32 1.442695, %v1560_v12  ;;  %v1566_v19 = vmul.f32 1.442695, %v1561_v17 }
 0x50a   : > { %v1557_v23 = vpop.f32.mrf.mxu3  ;;  %v1537_v5 = vpop.f32.mrf.mxu2 }
 0x50b   : > { %v1563_v8 = vadd.f32 %v1557_v23, %v1479_v4  ;;  %v1562_v9 = vadd.f32 %v1537_v5, %v1478_v14 }
 0x50d   : > { %v2192_v18 = vmul.f32 -1.442695, %v1563_v8 }
 0x50f   : > { %2280 = vpow2.f32 %v2192_v18 }
 0x510   : > { %2282 = vtanh.f32 %v1562_v9 }
 0x511   : > { %2284 = vpow2.f32 %v1564_v0 }
 0x512   : > { %2286 = vpow2.f32 %v1566_v19 }
 0x515   : > { %v2281_v10 = vpop.eup %2280 }
 0x516   : > { %v1572_v15 = vadd.f32 1.0, %v2281_v10  ;;  %v2283_v1 = vpop.eup %2282 }
 0x517   : > { %v2285_v6 = vpop.eup %2284 }
 0x518   : > { %2288 = vrcp.f32 %v1572_v15  ;;  %v2287_v3 = vpop.eup %2286  ;;  %v1589_v22 = vmul.f32 %v2285_v6, %v2283_v1  ;;  %v1584_v17 = vand.u32 2147483648, %v1572_v15  ;;  %v1582_v12 = vand.u32 2147483647, %v1572_v15 }
 0x519   : > { %v1588_v2 = vmul.f32 %v2287_v3, %v3412_v13  ;;  %vm1578_vm2 = vweird.f32 %v1572_v15 }
 0x51a   : > { %v1585_v11 = vor.u32 1.1754944e-38, %v1584_v17  ;;  %vm1583_vm4 = vcmp.eq.f32.partialorder %v1582_v12, 8.507059e+37 }
 0x51b   : > { %v3483_v4 = vadd.f32 %v1589_v22, %v1588_v2 }
 0x51d   : > { %2290 = vtanh.f32 %v3483_v4 }
 0x51e   : > { %v2289_v16 = vpop.eup %2288 }
 0x51f   : > { %v1574_v7 = vmul.f32 %v2289_v16, %v1572_v15  ;;  %vm1579_vm1 = vweird.f32 %v2289_v16 }
 0x520   : > { %vm1580_vm3 = vmor %vm1578_vm2, %vm1579_vm1 }
 0x521   : > { %v1575_v5 = vsub.f32 1.0, %v1574_v7 }
 0x523   : > { %v1576_v9 = vmul.f32 %v2289_v16, %v1575_v5  ;;  %v2291_v6 = vpop.eup %2290 }
 0x525   : > { %v1577_v10 = vadd.f32 %v2289_v16, %v1576_v9 }
 0x527   : > { %v1581_v23 = vsel %vm1580_vm3, %v2289_v16, %v1577_v10 }
 0x528   : > { %v1586_v1 = vsel %vm1583_vm4, %v1585_v11, %v1581_v23  ;;  %v1723_v11 = vld [vmem:[#allocation2 + $0x28] sm:$0xff]  ;;  %v1721_v23 = vld [vmem:[#allocation2 + $0xd0] sm:$0xff] }
 0x529   : > { %v1592_v13 = vmul.f32 %v2291_v6, %v1586_v1 }
 0x52b   : > { %2193 = vst [vmem:[%s3584_s5 + $0x20] sm:$0xff] %v1592_v13  ;;  %1618 = vmatmul.f32.vlgmr.msrb.gmra.mxu0 %v1592_v13  ;;  %1638 = vmatmul.f32.vlgmr.msrb.gmra.mxu1 %v1592_v13 }
 0x52c   : > { %1658 = vmatmul.f32.vlgmr.msrb.gmra.mxu2 %v1592_v13  ;;  %1678 = vmatmul.f32.vlgmr.msrb.gmra.mxu3 %v1592_v13 }
 0x52d   : > { %1846 = vmatpush.msrb.mxu0 %v2608_v60  ;;  %1866 = vmatpush.msrb.mxu1 %v2611_v61 }
 0x52e   : > { %1886 = vmatpush.msrb.mxu2 %v2614_v62  ;;  %1906 = vmatpush.msrb.mxu3 %v2617_v63 }
 0x52f   : > { %1847 = vmatpush.msrb.mxu0 %v2596_v56  ;;  %1867 = vmatpush.msrb.mxu1 %v2599_v57 }
 0x530   : > { %1887 = vmatpush.msrb.mxu2 %v2602_v58  ;;  %1907 = vmatpush.msrb.mxu3 %v2605_v59 }
 0x531   : > { %1848 = vmatpush.msrb.mxu0 %v2581_v52  ;;  %1868 = vmatpush.msrb.mxu1 %v2584_v53 }
 0x532   : > { %1888 = vmatpush.msrb.mxu2 %v2590_v54  ;;  %1908 = vmatpush.msrb.mxu3 %v2593_v55 }
 0x533   : > { %1849 = vmatpush.msrb.mxu0 %v2569_v48  ;;  %1869 = vmatpush.msrb.mxu1 %v2572_v49 }
 0x534   : > { %1889 = vmatpush.msrb.mxu2 %v2575_v50  ;;  %1909 = vmatpush.msrb.mxu3 %v2578_v51  ;;  %v1600_v51 = vld [vmem:[#allocation2 + $0x70] sm:$0xff] }
 0x535   : > { %1850 = vmatpush.msrb.mxu0 %v2556_v44  ;;  %1870 = vmatpush.msrb.mxu1 %v2560_v45  ;;  %v1598_v44 = vld [vmem:[#allocation2 + $0xe0] sm:$0xff] }
 0x536   : > { %1890 = vmatpush.msrb.mxu2 %v2563_v46  ;;  %1910 = vmatpush.msrb.mxu3 %v2566_v47  ;;  %v1601_v46 = vld [vmem:[#allocation2 + $0xc0] sm:$0xff]  ;;  %v1599_v47 = vld [vmem:[#allocation2 + $0x90] sm:$0xff] }
 0x537   : > { %1851 = vmatpush.msrb.mxu0 %v2544_v40  ;;  %1871 = vmatpush.msrb.mxu1 %v2547_v41  ;;  %v3775_v40 = vld [vmem:[#allocation4_spill] sm:$0xff]  ;;  %v3776_v41 = vld [vmem:[#allocation5_spill] sm:$0xff] }
 0x538   : > { %1891 = vmatpush.msrb.mxu2 %v2550_v42  ;;  %1911 = vmatpush.msrb.mxu3 %v2553_v43  ;;  %v3777_v42 = vld [vmem:[#allocation6_spill] sm:$0xff]  ;;  %v3778_v43 = vld [vmem:[#allocation7_spill] sm:$0xff] }
 0x539   : > { %1852 = vmatpush.msrb.mxu0 %v2532_v36  ;;  %1872 = vmatpush.msrb.mxu1 %v2535_v37  ;;  %v3771_v36 = vld [vmem:[#allocation8_spill] sm:$0xff]  ;;  %v3772_v37 = vld [vmem:[#allocation9_spill] sm:$0xff] }
 0x53a   : > { %1892 = vmatpush.msrb.mxu2 %v2538_v38  ;;  %1912 = vmatpush.msrb.mxu3 %v2541_v39  ;;  %v3773_v38 = vld [vmem:[#allocation10_spill] sm:$0xff]  ;;  %v3774_v39 = vld [vmem:[#allocation11_spill] sm:$0xff] }
 0x53b   : > { %1853 = vmatpush.msrb.mxu0 %v2520_v32  ;;  %1873 = vmatpush.msrb.mxu1 %v2523_v33  ;;  %v3757_v32 = vld [vmem:[#allocation24_spill] sm:$0xff]  ;;  %v3768_v33 = vld [vmem:[#allocation13_spill] sm:$0xff] }
 0x53c   : > { %1893 = vmatpush.msrb.mxu2 %v2526_v34  ;;  %1913 = vmatpush.msrb.mxu3 %v2529_v35  ;;  %v3769_v34 = vld [vmem:[#allocation14_spill] sm:$0xff]  ;;  %v3770_v35 = vld [vmem:[#allocation15_spill] sm:$0xff] }
 0x53d   : > { %1854 = vmatpush.msrb.mxu0 %v2508_v28  ;;  %1874 = vmatpush.msrb.mxu1 %v2511_v29  ;;  %v3758_v28 = vld [vmem:[#allocation25_spill] sm:$0xff]  ;;  %v3759_v29 = vld [vmem:[#allocation20_spill] sm:$0xff] }
 0x53e   : > { %1894 = vmatpush.msrb.mxu2 %v2514_v30  ;;  %1914 = vmatpush.msrb.mxu3 %v2517_v31  ;;  %v3760_v30 = vld [vmem:[#allocation21_spill] sm:$0xff]  ;;  %v3761_v31 = vld [vmem:[#allocation22_spill] sm:$0xff] }
 0x53f   : > { %1855 = vmatpush.msrb.mxu0 %v2496_v24  ;;  %1875 = vmatpush.msrb.mxu1 %v2499_v25  ;;  %v3762_v24 = vld [vmem:[#allocation23_spill] sm:$0xff]  ;;  %v3763_v25 = vld [vmem:[#allocation16_spill] sm:$0xff] }
 0x540   : > { %1895 = vmatpush.msrb.mxu2 %v2502_v26  ;;  %1915 = vmatpush.msrb.mxu3 %v2505_v27  ;;  %v3764_v26 = vld [vmem:[#allocation17_spill] sm:$0xff]  ;;  %v3765_v27 = vld [vmem:[#allocation18_spill] sm:$0xff] }
 0x541   : > { %1856 = vmatpush.msrb.mxu0 %v2484_v20  ;;  %1876 = vmatpush.msrb.mxu1 %v2487_v21  ;;  %v3766_v20 = vld [vmem:[#allocation19_spill] sm:$0xff]  ;;  %v3767_v21 = vld [vmem:[#allocation12_spill] sm:$0xff] }
 0x542   : > { %1896 = vmatpush.msrb.mxu2 %v3757_v32  ;;  %1916 = vmatpush.msrb.mxu3 %v3758_v28  ;;  %v1722_v32 = vld [vmem:[#allocation2 + $0x10] sm:$0xff] }
 0x543   : > { %1857 = vmatpush.msrb.mxu0 %v3759_v29  ;;  %1877 = vmatpush.msrb.mxu1 %v3760_v30 }
 0x544   : > { %1897 = vmatpush.msrb.mxu2 %v3761_v31  ;;  %1917 = vmatpush.msrb.mxu3 %v3762_v24 }
 0x545   : > { %1858 = vmatpush.msrb.mxu0 %v3763_v25  ;;  %1878 = vmatpush.msrb.mxu1 %v3764_v26 }
 0x546   : > { %1898 = vmatpush.msrb.mxu2 %v3765_v27  ;;  %1918 = vmatpush.msrb.mxu3 %v3766_v20 }
 0x547   : > { %1859 = vmatpush.msrb.mxu0 %v3767_v21  ;;  %1879 = vmatpush.msrb.mxu1 %v3768_v33 }
 0x548   : > { %1899 = vmatpush.msrb.mxu2 %v3769_v34  ;;  %1919 = vmatpush.msrb.mxu3 %v3770_v35 }
 0x549   : > { %1860 = vmatpush.msrb.mxu0 %v3771_v36  ;;  %1880 = vmatpush.msrb.mxu1 %v3772_v37 }
 0x54a   : > { %1900 = vmatpush.msrb.mxu2 %v3773_v38  ;;  %1920 = vmatpush.msrb.mxu3 %v3774_v39 }
 0x54b   : > { %1861 = vmatpush.msrb.mxu0 %v3775_v40  ;;  %1881 = vmatpush.msrb.mxu1 %v3776_v41 }
 0x54c   : > { %1901 = vmatpush.msrb.mxu2 %v3777_v42  ;;  %1921 = vmatpush.msrb.mxu3 %v3778_v43 }
 0x5a8   : > { %v1619_v45 = vpop.f32.mrf.mxu0  ;;  %v1639_v48 = vpop.f32.mrf.mxu1 }
 0x5a9   : > { %v1682_v50 = vadd.f32 %v1619_v45, %v1598_v44  ;;  %v1683_v54 = vadd.f32 %v1639_v48, %v1599_v47 }
 0x5ab   : > { %v1686_v57 = vmul.f32 1.442695, %v1682_v50  ;;  %v1688_v58 = vmul.f32 1.442695, %v1683_v54  ;;  %v1842_v50 = vld [vmem:[#allocation2 + $0xa0] sm:$0xff] }
 0x5af   : > { %v1679_v49 = vpop.f32.mrf.mxu3  ;;  %v1659_v52 = vpop.f32.mrf.mxu2 }
 0x5b0   : > { %v1685_v53 = vadd.f32 %v1679_v49, %v1601_v46  ;;  %v1684_v56 = vadd.f32 %v1659_v52, %v1600_v51  ;;  %v1843_v51 = vld [vmem:[#allocation2 + $0xf8] sm:$0xff] }
 0x5b2   : > { %v2194_v55 = vmul.f32 -1.442695, %v1685_v53 }
 0x5b4   : > { %2292 = vpow2.f32 %v2194_v55 }
 0x5b5   : > { %2294 = vtanh.f32 %v1684_v56 }
 0x5b6   : > { %2296 = vpow2.f32 %v1686_v57 }
 0x5b7   : > { %2298 = vpow2.f32 %v1688_v58  ;;  %v1844_v58 = vld [vmem:[#allocation2 + $0x20] sm:$0xff] }
 0x5ba   : > { %v2293_v59 = vpop.eup %2292 }
 0x5bb   : > { %v1694_v60 = vadd.f32 1.0, %v2293_v59  ;;  %v2295_v61 = vpop.eup %2294  ;;  %v1845_v59 = vld [vmem:[#allocation2 + $0x98] sm:$0xff] }
 0x5bc   : > { %v2297_v62 = vpop.eup %2296 }
 0x5bd   : > { %2300 = vrcp.f32 %v1694_v60  ;;  %v2299_v63 = vpop.eup %2298  ;;  %v1711_v22 = vmul.f32 %v2297_v62, %v2295_v61  ;;  %v1706_v19 = vand.u32 2147483648, %v1694_v60  ;;  %v1704_v2 = vand.u32 2147483647, %v1694_v60 }
 0x5be   : > { %v1710_v3 = vmul.f32 %v2299_v63, %v3483_v4  ;;  %vm1700_vm6 = vweird.f32 %v1694_v60  ;;  %v1720_v4 = vld [vmem:[#allocation2 + $0xa8] sm:$0xff] }
 0x5bf   : > { %v1707_v7 = vor.u32 1.1754944e-38, %v1706_v19  ;;  %vm1705_vm8 = vcmp.eq.f32.partialorder %v1704_v2, 8.507059e+37 }
 0x5c0   : > { %v1712_v8 = vadd.f32 %v1711_v22, %v1710_v3 }
 0x5c2   : > { %2302 = vtanh.f32 %v1712_v8 }
 0x5c3   : > { %v2301_v14 = vpop.eup %2300 }
 0x5c4   : > { %v1696_v18 = vmul.f32 %v2301_v14, %v1694_v60  ;;  %vm1701_vm5 = vweird.f32 %v2301_v14 }
 0x5c5   : > { %vm1702_vm7 = vmor %vm1700_vm6, %vm1701_vm5 }
 0x5c6   : > { %v1697_v0 = vsub.f32 1.0, %v1696_v18 }
 0x5c8   : > { %v1698_v15 = vmul.f32 %v2301_v14, %v1697_v0  ;;  %v2303_v17 = vpop.eup %2302 }
 0x5ca   : > { %v1699_v16 = vadd.f32 %v2301_v14, %v1698_v15 }
 0x5cc   : > { %v1703_v5 = vsel %vm1702_vm7, %v2301_v14, %v1699_v16 }
 0x5cd   : > { %v1708_v9 = vsel %vm1705_vm8, %v1707_v7, %v1703_v5 }
 0x5ce   : > { %v1714_v12 = vmul.f32 %v2303_v17, %v1708_v9 }
 0x5d0   : > { %2195 = vst [vmem:[%s3584_s5 + $0x28] sm:$0xff] %v1714_v12  ;;  %1740 = vmatmul.f32.vlgmr.msra.gmra.mxu0 %v1714_v12  ;;  %1760 = vmatmul.f32.vlgmr.msra.gmra.mxu1 %v1714_v12 }
 0x5d1   : > { %1780 = vmatmul.f32.vlgmr.msra.gmra.mxu2 %v1714_v12  ;;  %1800 = vmatmul.f32.vlgmr.msra.gmra.mxu3 %v1714_v12 }
 0x64d   : > { %v1741_v10 = vpop.f32.mrf.mxu0  ;;  %v1761_v6 = vpop.f32.mrf.mxu1 }
 0x64e   : > { %v1804_v13 = vadd.f32 %v1741_v10, %v1720_v4  ;;  %v1805_v30 = vadd.f32 %v1761_v6, %v1721_v23 }
 0x650   : > { %v1808_v25 = vmul.f32 1.442695, %v1804_v13  ;;  %v1810_v26 = vmul.f32 1.442695, %v1805_v30 }
 0x654   : > { %v1801_v1 = vpop.f32.mrf.mxu3  ;;  %v1781_v28 = vpop.f32.mrf.mxu2 }
 0x655   : > { %v1807_v29 = vadd.f32 %v1801_v1, %v1723_v11  ;;  %v1806_v24 = vadd.f32 %v1781_v28, %v1722_v32 }
 0x657   : > { %v2196_v31 = vmul.f32 -1.442695, %v1807_v29 }
 0x659   : > { %2304 = vpow2.f32 %v2196_v31 }
 0x65a   : > { %2306 = vtanh.f32 %v1806_v24 }
 0x65b   : > { %2308 = vpow2.f32 %v1808_v25 }
 0x65c   : > { %2310 = vpow2.f32 %v1810_v26 }
 0x65f   : > { %v2305_v27 = vpop.eup %2304 }
 0x660   : > { %v1816_v20 = vadd.f32 1.0, %v2305_v27  ;;  %v2307_v21 = vpop.eup %2306 }
 0x661   : > { %v2309_v33 = vpop.eup %2308 }
 0x662   : > { %2312 = vrcp.f32 %v1816_v20  ;;  %v2311_v34 = vpop.eup %2310  ;;  %v1833_v35 = vmul.f32 %v2309_v33, %v2307_v21  ;;  %v1828_v41 = vand.u32 2147483648, %v1816_v20  ;;  %v1826_v43 = vand.u32 2147483647, %v1816_v20 }
 0x663   : > { %v1832_v36 = vmul.f32 %v2311_v34, %v1712_v8  ;;  %vm1822_vm10 = vweird.f32 %v1816_v20 }
 0x664   : > { %v1829_v45 = vor.u32 1.1754944e-38, %v1828_v41  ;;  %vm1827_vm12 = vcmp.eq.f32.partialorder %v1826_v43, 8.507059e+37 }
 0x665   : > { %v1834_v38 = vadd.f32 %v1833_v35, %v1832_v36 }
 0x667   : > { %2314 = vtanh.f32 %v1834_v38 }
 0x668   : > { %v2313_v37 = vpop.eup %2312 }
 0x669   : > { %v1818_v39 = vmul.f32 %v2313_v37, %v1816_v20  ;;  %vm1823_vm9 = vweird.f32 %v2313_v37 }
 0x66a   : > { %vm1824_vm11 = vmor %vm1822_vm10, %vm1823_vm9 }
 0x66b   : > { %v1819_v40 = vsub.f32 1.0, %v1818_v39 }
 0x66d   : > { %v1820_v42 = vmul.f32 %v2313_v37, %v1819_v40  ;;  %v2315_v47 = vpop.eup %2314 }
 0x66f   : > { %v1821_v44 = vadd.f32 %v2313_v37, %v1820_v42 }
 0x671   : > { %v1825_v46 = vsel %vm1824_vm11, %v2313_v37, %v1821_v44 }
 0x672   : > { %v1830_v48 = vsel %vm1827_vm12, %v1829_v45, %v1825_v46 }
 0x673   : > { %v1836_v49 = vmul.f32 %v2315_v47, %v1830_v48 }
 0x675   : > { %2197 = vst [vmem:[%s3584_s5 + $0x30] sm:$0xff] %v1836_v49  ;;  %1862 = vmatmul.f32.vlgmr.msrb.gmra.mxu0 %v1836_v49  ;;  %1882 = vmatmul.f32.vlgmr.msrb.gmra.mxu1 %v1836_v49 }
 0x676   : > { %1902 = vmatmul.f32.vlgmr.msrb.gmra.mxu2 %v1836_v49  ;;  %1922 = vmatmul.f32.vlgmr.msrb.gmra.mxu3 %v1836_v49 }
 0x6f2   : > { %v1863_v52 = vpop.f32.mrf.mxu0  ;;  %v1883_v53 = vpop.f32.mrf.mxu1 }
 0x6f3   : > { %v1926_v54 = vadd.f32 %v1863_v52, %v1842_v50  ;;  %v1927_v55 = vadd.f32 %v1883_v53, %v1843_v51 }
 0x6f5   : > { %v1932_v56 = vmul.f32 1.442695, %v1927_v55  ;;  %v1930_v57 = vmul.f32 1.442695, %v1926_v54 }
 0x6f7   : > { %2316 = vpow2.f32 %v1932_v56 }
 0x6f8   : > { %2318 = vpow2.f32 %v1930_v57 }
 0x6f9   : > { %v1903_v60 = vpop.f32.mrf.mxu2  ;;  %v1923_v61 = vpop.f32.mrf.mxu3 }
 0x6fa   : > { %v1928_v62 = vadd.f32 %v1903_v60, %v1844_v58  ;;  %v1929_v63 = vadd.f32 %v1923_v61, %v1845_v59 }
 0x6fc   : > { %2320 = vtanh.f32 %v1928_v62  ;;  %v2198_v22 = vmul.f32 -1.442695, %v1929_v63 }
 0x6fd   : > { %v2317_v3 = vpop.eup %2316 }
 0x6fe   : > { %2322 = vpow2.f32 %v2198_v22  ;;  %v2319_v14 = vpop.eup %2318  ;;  %v1954_v18 = vmul.f32 %v2317_v3, %v1834_v38 }
 0x702   : > { %v2321_v8 = vpop.eup %2320 }
 0x703   : > { %v1955_v0 = vmul.f32 %v2321_v8, %v2319_v14 }
 0x704   : > { %v2323_v19 = vpop.eup %2322 }
 0x705   : > { %v1956_v15 = vadd.f32 %v1955_v0, %v1954_v18  ;;  %v1938_v2 = vadd.f32 1.0, %v2323_v19 }
 0x707   : > { %1965 = vst [vmem:[%s1964_s17] sm:$0xff] %v1956_v15  ;;  %2324 = vrcp.f32 %v1938_v2  ;;  %v1950_v17 = vand.u32 2147483648, %v1938_v2  ;;  %v1948_v12 = vand.u32 2147483647, %v1938_v2  ;;  %vm1944_vm14 = vweird.f32 %v1938_v2 }
 0x708   : > { %2326 = vtanh.f32 %v1956_v15 }
 0x709   : > { %v1951_v10 = vor.u32 1.1754944e-38, %v1950_v17  ;;  %vm1949_vm0 = vcmp.eq.f32.partialorder %v1948_v12, 8.507059e+37 }
 0x70d   : > { %v2325_v16 = vpop.eup %2324 }
 0x70e   : > { %v1940_v7 = vmul.f32 %v2325_v16, %v1938_v2  ;;  %vm1945_vm13 = vweird.f32 %v2325_v16  ;;  %v2327_v23 = vpop.eup %2326 }
 0x70f   : > { %vm1946_vm15 = vmor %vm1944_vm14, %vm1945_vm13 }
 0x710   : > { %v1941_v5 = vsub.f32 1.0, %v1940_v7 }
 0x712   : > { %v1942_v9 = vmul.f32 %v2325_v16, %v1941_v5 }
 0x714   : > { %v1943_v4 = vadd.f32 %v2325_v16, %v1942_v9 }
 0x716   : > { %v1947_v11 = vsel %vm1946_vm15, %v2325_v16, %v1943_v4 }
 0x717   : > { %v1952_v6 = vsel %vm1949_vm0, %v1951_v10, %v1947_v11 }
 0x718   : > { %v1958_v1 = vmul.f32 %v2327_v23, %v1952_v6 }
 0x71a   : > { %2199 = vst [vmem:[%s3584_s5 + $0x38] sm:$0xff] %v1958_v1 }
 0x71b   : > { %1963 = vst [vmem:[%s1962_s19] sm:$0xff] %v1958_v1 }
 0x71c PF: > { %s18_s26 = sadd.s32 1, %s2350_s26   ;;  %s3779_s24 = smov %s2346_s25 }
 0x71d   : > { %p15_p7 = scmp.ge.s32.totalorder %s18_s26, 4   ;;  %s3780_s25 = smov %s3782_s27 }
 0x71f   :  { %17 = sbr.rel (!%p15_p7) target bundleno = 2 (0x2), region = 128 }

</bundles_post_ra>
